<compile_context>
chip_gen: v5e
topology: v5e:2x2
jax: 0.10.0
libtpu: 0.0.40
codegen_flags: <defaults>
</compile_context>

<pallas_src>
import math
import jax
import jax.numpy as jnp
from jax.experimental import pallas as pl
from jax.experimental.pallas import tpu as pltpu

N_PAD = 8  # f32 sublane count: pad batch so all per-step slices are sublane-aligned


# ------------------------------ Pallas kernel ------------------------------
def lstm_close_kernel(xobs_ref, gate_ref, par_ref, out_ref):
    T, Np, ny = out_ref.shape
    nx = xobs_ref.shape[1] - 1
    H = (gate_ref.shape[0] - 1) // 2

    # ---- one-time prologue: unpack the two packed parameter slabs ----
    w_fused = gate_ref[0:2 * H, :]             # (2H, 4H) = [[W_ih.T],[W_hh.T]], lanes i|f|g|o
    b_g     = gate_ref[2 * H:2 * H + 1, :]     # (1, 4H)  = b_ih + b_hh
    w_in_x  = par_ref[0:nx, 0:H]               # (nx, H)  linearIn weight, x columns
    w_in_y  = par_ref[nx:nx + 1, 0:H]          # (1, H)   linearIn column for fed-back yt
    b_in    = par_ref[nx + 1:nx + 2, 0:H]      # (1, H)
    w_out   = par_ref[nx + 2:nx + 2 + H, 0:ny]       # (H, ny)
    b_out   = par_ref[nx + 2 + H:nx + 3 + H, 0:ny]   # (1, ny)

    xobs = xobs_ref[...]                       # (T*Np, nx+1); last column = obs (NaN gaps)
    obs_all = xobs[:, nx:nx + 1]               # (T*Np, 1)
    # Hoisted x-part of linearIn: one (T*Np, nx) @ (nx, H) matmul for all timesteps.
    x_part = jnp.dot(xobs[:, 0:nx], w_in_x,
                     preferred_element_type=jnp.float32) + b_in          # (T*Np, H)

    h = jnp.zeros((Np, H), jnp.float32)        # h0 = None -> zeros
    c = jnp.zeros((Np, H), jnp.float32)        # c0 = None -> zeros
    yt = jnp.zeros((Np, 1), jnp.float32)       # closed-loop feedback, starts at 0

    ys = []
    # Fully unrolled time recurrence (T static & small); all slices 8-aligned.
    for t in range(T):
        lo = t * Np
        obs = obs_all[lo:lo + Np, :]
        yt = jnp.where(obs == obs, obs, yt)    # fillObs: NaN -> keep previous prediction
        a = jnp.maximum(x_part[lo:lo + Np, :] + yt * w_in_y, 0.0)        # relu(linearIn)
        ah = jnp.concatenate([a, h], axis=1)                             # (Np, 2H)
        gates = (jnp.dot(ah, w_fused, preferred_element_type=jnp.float32)
                 + b_g)                                                  # (Np, 4H)
        sg = jax.nn.sigmoid(gates)             # 1 EUP pass over the full 128-lane vreg
        tg = jnp.tanh(gates)                   # 1 EUP pass
        i_g = sg[:, 0 * H:1 * H]
        f_g = sg[:, 1 * H:2 * H]
        g_g = tg[:, 2 * H:3 * H]
        o_g = sg[:, 3 * H:4 * H]
        c = f_g * c + i_g * g_g
        h = o_g * jnp.tanh(c)                  # 3rd (and last) EUP pass this step
        y_t = jnp.dot(h, w_out, preferred_element_type=jnp.float32) + b_out   # (Np, ny)
        ys.append(y_t)
        yt = y_t[:, 0:1]                       # feed prediction of var 0 back
    out_ref[...] = jnp.stack(ys, axis=0)       # single writeback after the loop


def lstm_close_forward(x, y_obs, lin_in_w, lin_in_b, w_ih, w_hh, b_ih, b_hh,
                       lin_out_w, lin_out_b):
    """x: (T, N, nx); y_obs: (T, N, 1) with NaN gaps; params in PyTorch layouts."""
    T, N, nx = x.shape
    H = lin_in_b.shape[0]
    ny = lin_out_b.shape[0]
    L = 4 * H

    # --- input slab: x and obs concatenated, batch padded to 8 sublanes -> (T*8, nx+1)
    xobs = jnp.concatenate([x, y_obs], axis=2)
    xobs = jnp.pad(xobs, ((0, 0), (0, N_PAD - N), (0, 0))).reshape(T * N_PAD, nx + 1)
    xobs = xobs.astype(jnp.float32)

    # --- gate slab: fused recurrent weights + merged bias, (2H+1, 4H) = (65, 128)
    gate_slab = jnp.concatenate(
        [w_ih.T, w_hh.T, (b_ih + b_hh).reshape(1, L)], axis=0).astype(jnp.float32)

    # --- parameter slab: all small linearIn/linearOut params, lane-padded to 4H
    def padlane(a):
        return jnp.pad(a, ((0, 0), (0, L - a.shape[1])))
    par_slab = jnp.concatenate([
        padlane(lin_in_w[:, :nx].T),            # rows [0, nx)         w_in_x (nx, H)
        padlane(lin_in_w[:, nx:nx + 1].T),      # row  nx              w_in_y (1, H)
        padlane(lin_in_b.reshape(1, H)),        # row  nx+1            b_in
        padlane(lin_out_w.T),                   # rows [nx+2, nx+2+H)  w_out  (H, ny)
        padlane(lin_out_b.reshape(1, ny)),      # row  nx+2+H          b_out
    ], axis=0).astype(jnp.float32)

    vmem = pl.BlockSpec(memory_space=pltpu.MemorySpace.VMEM)
    # TODO(synk): at realistic hydroDL sizes (ngrid ~1e3, T ~365) add a batch grid
    # (BlockSpec tiling over N, dimension_semantics=("parallel",)); mandatory on
    # v7x (2 TCs, 64 MiB VMEM). At this demo size a gridless single program wins.
    out = pl.pallas_call(
        lstm_close_kernel,
        out_shape=jax.ShapeDtypeStruct((T, N_PAD, ny), jnp.float32),
        in_specs=[vmem, vmem, vmem],
        out_specs=vmem,
    )(xobs, gate_slab, par_slab)
    return out[:, :N, :]


# ----------------------------------- main -----------------------------------
if __name__ == "__main__":
    # LstmCloseModel config
    nx, ny, hidden = 4, 2, 32
    T, N = 8, 2                      # sequence length, batch (ngrid)

    key = jax.random.PRNGKey(0)
    ks = jax.random.split(key, 12)

    def unif(k, shape, bound):
        return jax.random.uniform(k, shape, jnp.float32, -bound, bound)

    # ---- parameters in PyTorch layouts (deterministic synthetic init) ----
    bl = 1.0 / math.sqrt(nx + 1)
    lin_in_w = unif(ks[0], (hidden, nx + 1), bl)     # torch Linear (out, in)
    lin_in_b = unif(ks[1], (hidden,), bl)
    sh = 1.0 / math.sqrt(hidden)
    w_ih = unif(ks[2], (4 * hidden, hidden), sh)     # LSTMcell_tied params (i,f,g,o)
    w_hh = unif(ks[3], (4 * hidden, hidden), sh)
    b_ih = unif(ks[4], (4 * hidden,), sh)
    b_hh = unif(ks[5], (4 * hidden,), sh)
    lin_out_w = unif(ks[6], (ny, hidden), sh)
    lin_out_b = unif(ks[7], (ny,), sh)

    # ---- inputs: x (T, ngrid, nx); observations y (T, ngrid, 1) with NaN gaps ----
    x = jax.random.normal(ks[8], (T, N, nx), jnp.float32) * 0.5
    y_clean = jax.random.normal(ks[9], (T, N, 1), jnp.float32) * 0.5
    nan_mask = jax.random.bernoulli(ks[10], 0.4, (T, N, 1))
    y_obs = jnp.where(nan_mask, jnp.nan, y_clean)

    # ---- forward pass via the Pallas kernel ----
    out = lstm_close_forward(x, y_obs, lin_in_w, lin_in_b, w_ih, w_hh, b_ih, b_hh,
                             lin_out_w, lin_out_b)
    out = jax.block_until_ready(out)

    # ---- pure-JAX reference (same math, XLA) for a sanity check ----
    def reference(x, y_obs):
        def step(carry, inp):
            h, c, yt = carry
            xt, obs = inp
            yt = jnp.where(obs == obs, obs, yt)
            xin = jnp.concatenate([xt, yt], axis=1)                 # (N, nx+1)
            a = jax.nn.relu(xin @ lin_in_w.T + lin_in_b)
            gates = a @ w_ih.T + b_ih + h @ w_hh.T + b_hh
            i_g = jax.nn.sigmoid(gates[:, 0:hidden])
            f_g = jax.nn.sigmoid(gates[:, hidden:2 * hidden])
            g_g = jnp.tanh(gates[:, 2 * hidden:3 * hidden])
            o_g = jax.nn.sigmoid(gates[:, 3 * hidden:4 * hidden])
            c = f_g * c + i_g * g_g
            h = o_g * jnp.tanh(c)
            y_t = h @ lin_out_w.T + lin_out_b
            return (h, c, y_t[:, 0:1]), y_t
        init = (jnp.zeros((N, hidden), jnp.float32),
                jnp.zeros((N, hidden), jnp.float32),
                jnp.zeros((N, 1), jnp.float32))
        _, ys = jax.lax.scan(step, init, (x, y_obs))
        return ys

    out_ref = jax.block_until_ready(reference(x, y_obs))

    assert out.shape == (T, N, ny)
    err = float(jnp.max(jnp.abs(out - out_ref)))
    # f32-vs-f32 at this size: tightened from 2e-2 to 1e-4 (catches layout bugs,
    # leaves margin for EUP-vs-XLA transcendental approximation differences).
    assert math.isfinite(err) and err < 1e-4, f"mismatch vs reference: {err}"
    print("KERNEL_OK")
</pallas_src>

<mosaic_0001>
module attributes {stable_mosaic.version = 11 : i64} {
  func.func @lstm_close_kernel(%arg0: memref<64x5xf32, #tpu.memory_space<vmem>>, %arg1: memref<65x128xf32, #tpu.memory_space<vmem>>, %arg2: memref<39x128xf32, #tpu.memory_space<vmem>>, %arg3: memref<8x8x2xf32, #tpu.memory_space<vmem>>) attributes {dimension_semantics = [], scalar_prefetch = 0 : i64, scratch_operands = 0 : i64, tpu.core_type = #tpu.core_type<tc>} {
    %c0 = arith.constant 0 : index
    %c0_0 = arith.constant 0 : index
    %0 = vector.load %arg1[%c0, %c0_0] : memref<65x128xf32, #tpu.memory_space<vmem>>, vector<64x128xf32>
    %c64 = arith.constant 64 : index
    %c0_1 = arith.constant 0 : index
    %1 = vector.load %arg1[%c64, %c0_1] : memref<65x128xf32, #tpu.memory_space<vmem>>, vector<1x128xf32>
    %c0_2 = arith.constant 0 : index
    %c0_3 = arith.constant 0 : index
    %2 = vector.load %arg2[%c0_2, %c0_3] : memref<39x128xf32, #tpu.memory_space<vmem>>, vector<4x32xf32>
    %c4 = arith.constant 4 : index
    %c0_4 = arith.constant 0 : index
    %3 = vector.load %arg2[%c4, %c0_4] : memref<39x128xf32, #tpu.memory_space<vmem>>, vector<1x32xf32>
    %c5 = arith.constant 5 : index
    %c0_5 = arith.constant 0 : index
    %4 = vector.load %arg2[%c5, %c0_5] : memref<39x128xf32, #tpu.memory_space<vmem>>, vector<1x32xf32>
    %c6 = arith.constant 6 : index
    %c0_6 = arith.constant 0 : index
    %5 = vector.load %arg2[%c6, %c0_6] : memref<39x128xf32, #tpu.memory_space<vmem>>, vector<32x2xf32>
    %c38 = arith.constant 38 : index
    %c0_7 = arith.constant 0 : index
    %6 = vector.load %arg2[%c38, %c0_7] : memref<39x128xf32, #tpu.memory_space<vmem>>, vector<1x2xf32>
    %c0_8 = arith.constant 0 : index
    %c0_9 = arith.constant 0 : index
    %7 = vector.load %arg0[%c0_8, %c0_9] : memref<64x5xf32, #tpu.memory_space<vmem>>, vector<64x5xf32>
    %8 = vector.extract_strided_slice %7 {offsets = [0, 4], sizes = [64, 1], strides = [1, 1]} : vector<64x5xf32> to vector<64x1xf32>
    %9 = vector.extract_strided_slice %7 {offsets = [0, 0], sizes = [64, 4], strides = [1, 1]} : vector<64x5xf32> to vector<64x4xf32>
    %cst = arith.constant dense<0.000000e+00> : vector<64x32xf32>
    %10 = tpu.matmul %9, %2, %cst {dimension_numbers = #tpu.dot_dimension_numbers<[1], [0], [0], [1], [0, 0, 1, 1], [], []>} : vector<64x4xf32>, vector<4x32xf32>, vector<64x32xf32> -> vector<64x32xf32>
    %11 = vector.broadcast %4 : vector<1x32xf32> to vector<64x32xf32>
    %12 = arith.addf %10, %11 : vector<64x32xf32>
    %cst_10 = arith.constant 0.000000e+00 : f32
    %13 = vector.broadcast %cst_10 : f32 to vector<8x32xf32>
    %cst_11 = arith.constant 0.000000e+00 : f32
    %14 = vector.broadcast %cst_11 : f32 to vector<8x32xf32>
    %cst_12 = arith.constant 0.000000e+00 : f32
    %15 = vector.broadcast %cst_12 : f32 to vector<8x1xf32>
    %16 = vector.extract_strided_slice %8 {offsets = [0, 0], sizes = [8, 1], strides = [1, 1]} : vector<64x1xf32> to vector<8x1xf32>
    %17 = arith.cmpf oeq, %16, %16 : vector<8x1xf32>
    %18 = arith.select %17, %16, %15 : vector<8x1xi1>, vector<8x1xf32>
    %19 = vector.extract_strided_slice %12 {offsets = [0, 0], sizes = [8, 32], strides = [1, 1]} : vector<64x32xf32> to vector<8x32xf32>
    %20 = vector.broadcast %18 : vector<8x1xf32> to vector<8x32xf32>
    %21 = vector.broadcast %3 : vector<1x32xf32> to vector<8x32xf32>
    %22 = arith.mulf %20, %21 : vector<8x32xf32>
    %23 = arith.addf %19, %22 : vector<8x32xf32>
    %cst_13 = arith.constant 0.000000e+00 : f32
    %24 = vector.broadcast %cst_13 : f32 to vector<8x32xf32>
    %25 = arith.maximumf %23, %24 : vector<8x32xf32>
    %26 = tpu.concatenate %25, %13 in 1 : vector<8x32xf32>, vector<8x32xf32> -> vector<8x64xf32>
    %cst_14 = arith.constant dense<0.000000e+00> : vector<8x128xf32>
    %27 = tpu.matmul %26, %0, %cst_14 {dimension_numbers = #tpu.dot_dimension_numbers<[1], [0], [0], [1], [0, 0, 1, 1], [], []>} : vector<8x64xf32>, vector<64x128xf32>, vector<8x128xf32> -> vector<8x128xf32>
    %28 = vector.broadcast %1 : vector<1x128xf32> to vector<8x128xf32>
    %29 = arith.addf %27, %28 : vector<8x128xf32>
    %30 = arith.negf %29 : vector<8x128xf32>
    %31 = math.exp %30 : vector<8x128xf32>
    %cst_15 = arith.constant 1.000000e+00 : f32
    %32 = vector.broadcast %cst_15 : f32 to vector<8x128xf32>
    %33 = arith.addf %32, %31 : vector<8x128xf32>
    %34 = arith.divf %32, %33 : vector<8x128xf32>
    %35 = math.tanh %29 : vector<8x128xf32>
    %36 = vector.extract_strided_slice %34 {offsets = [0, 0], sizes = [8, 32], strides = [1, 1]} : vector<8x128xf32> to vector<8x32xf32>
    %37 = vector.extract_strided_slice %34 {offsets = [0, 32], sizes = [8, 32], strides = [1, 1]} : vector<8x128xf32> to vector<8x32xf32>
    %38 = vector.extract_strided_slice %35 {offsets = [0, 64], sizes = [8, 32], strides = [1, 1]} : vector<8x128xf32> to vector<8x32xf32>
    %39 = vector.extract_strided_slice %34 {offsets = [0, 96], sizes = [8, 32], strides = [1, 1]} : vector<8x128xf32> to vector<8x32xf32>
    %40 = arith.mulf %37, %14 : vector<8x32xf32>
    %41 = arith.mulf %36, %38 : vector<8x32xf32>
    %42 = arith.addf %40, %41 : vector<8x32xf32>
    %43 = math.tanh %42 : vector<8x32xf32>
    %44 = arith.mulf %39, %43 : vector<8x32xf32>
    %cst_16 = arith.constant dense<0.000000e+00> : vector<8x2xf32>
    %45 = tpu.matmul %44, %5, %cst_16 {dimension_numbers = #tpu.dot_dimension_numbers<[1], [0], [0], [1], [0, 0, 1, 1], [], []>} : vector<8x32xf32>, vector<32x2xf32>, vector<8x2xf32> -> vector<8x2xf32>
    %46 = vector.broadcast %6 : vector<1x2xf32> to vector<8x2xf32>
    %47 = arith.addf %45, %46 : vector<8x2xf32>
    %48 = vector.extract_strided_slice %47 {offsets = [0, 0], sizes = [8, 1], strides = [1, 1]} : vector<8x2xf32> to vector<8x1xf32>
    %49 = vector.extract_strided_slice %8 {offsets = [8, 0], sizes = [8, 1], strides = [1, 1]} : vector<64x1xf32> to vector<8x1xf32>
    %50 = arith.cmpf oeq, %49, %49 : vector<8x1xf32>
    %51 = arith.select %50, %49, %48 : vector<8x1xi1>, vector<8x1xf32>
    %52 = vector.extract_strided_slice %12 {offsets = [8, 0], sizes = [8, 32], strides = [1, 1]} : vector<64x32xf32> to vector<8x32xf32>
    %53 = vector.broadcast %51 : vector<8x1xf32> to vector<8x32xf32>
    %54 = vector.broadcast %3 : vector<1x32xf32> to vector<8x32xf32>
    %55 = arith.mulf %53, %54 : vector<8x32xf32>
    %56 = arith.addf %52, %55 : vector<8x32xf32>
    %cst_17 = arith.constant 0.000000e+00 : f32
    %57 = vector.broadcast %cst_17 : f32 to vector<8x32xf32>
    %58 = arith.maximumf %56, %57 : vector<8x32xf32>
    %59 = tpu.concatenate %58, %44 in 1 : vector<8x32xf32>, vector<8x32xf32> -> vector<8x64xf32>
    %cst_18 = arith.constant dense<0.000000e+00> : vector<8x128xf32>
    %60 = tpu.matmul %59, %0, %cst_18 {dimension_numbers = #tpu.dot_dimension_numbers<[1], [0], [0], [1], [0, 0, 1, 1], [], []>} : vector<8x64xf32>, vector<64x128xf32>, vector<8x128xf32> -> vector<8x128xf32>
    %61 = vector.broadcast %1 : vector<1x128xf32> to vector<8x128xf32>
    %62 = arith.addf %60, %61 : vector<8x128xf32>
    %63 = arith.negf %62 : vector<8x128xf32>
    %64 = math.exp %63 : vector<8x128xf32>
    %cst_19 = arith.constant 1.000000e+00 : f32
    %65 = vector.broadcast %cst_19 : f32 to vector<8x128xf32>
    %66 = arith.addf %65, %64 : vector<8x128xf32>
    %67 = arith.divf %65, %66 : vector<8x128xf32>
    %68 = math.tanh %62 : vector<8x128xf32>
    %69 = vector.extract_strided_slice %67 {offsets = [0, 0], sizes = [8, 32], strides = [1, 1]} : vector<8x128xf32> to vector<8x32xf32>
    %70 = vector.extract_strided_slice %67 {offsets = [0, 32], sizes = [8, 32], strides = [1, 1]} : vector<8x128xf32> to vector<8x32xf32>
    %71 = vector.extract_strided_slice %68 {offsets = [0, 64], sizes = [8, 32], strides = [1, 1]} : vector<8x128xf32> to vector<8x32xf32>
    %72 = vector.extract_strided_slice %67 {offsets = [0, 96], sizes = [8, 32], strides = [1, 1]} : vector<8x128xf32> to vector<8x32xf32>
    %73 = arith.mulf %70, %42 : vector<8x32xf32>
    %74 = arith.mulf %69, %71 : vector<8x32xf32>
    %75 = arith.addf %73, %74 : vector<8x32xf32>
    %76 = math.tanh %75 : vector<8x32xf32>
    %77 = arith.mulf %72, %76 : vector<8x32xf32>
    %cst_20 = arith.constant dense<0.000000e+00> : vector<8x2xf32>
    %78 = tpu.matmul %77, %5, %cst_20 {dimension_numbers = #tpu.dot_dimension_numbers<[1], [0], [0], [1], [0, 0, 1, 1], [], []>} : vector<8x32xf32>, vector<32x2xf32>, vector<8x2xf32> -> vector<8x2xf32>
    %79 = vector.broadcast %6 : vector<1x2xf32> to vector<8x2xf32>
    %80 = arith.addf %78, %79 : vector<8x2xf32>
    %81 = vector.extract_strided_slice %80 {offsets = [0, 0], sizes = [8, 1], strides = [1, 1]} : vector<8x2xf32> to vector<8x1xf32>
    %82 = vector.extract_strided_slice %8 {offsets = [16, 0], sizes = [8, 1], strides = [1, 1]} : vector<64x1xf32> to vector<8x1xf32>
    %83 = arith.cmpf oeq, %82, %82 : vector<8x1xf32>
    %84 = arith.select %83, %82, %81 : vector<8x1xi1>, vector<8x1xf32>
    %85 = vector.extract_strided_slice %12 {offsets = [16, 0], sizes = [8, 32], strides = [1, 1]} : vector<64x32xf32> to vector<8x32xf32>
    %86 = vector.broadcast %84 : vector<8x1xf32> to vector<8x32xf32>
    %87 = vector.broadcast %3 : vector<1x32xf32> to vector<8x32xf32>
    %88 = arith.mulf %86, %87 : vector<8x32xf32>
    %89 = arith.addf %85, %88 : vector<8x32xf32>
    %cst_21 = arith.constant 0.000000e+00 : f32
    %90 = vector.broadcast %cst_21 : f32 to vector<8x32xf32>
    %91 = arith.maximumf %89, %90 : vector<8x32xf32>
    %92 = tpu.concatenate %91, %77 in 1 : vector<8x32xf32>, vector<8x32xf32> -> vector<8x64xf32>
    %cst_22 = arith.constant dense<0.000000e+00> : vector<8x128xf32>
    %93 = tpu.matmul %92, %0, %cst_22 {dimension_numbers = #tpu.dot_dimension_numbers<[1], [0], [0], [1], [0, 0, 1, 1], [], []>} : vector<8x64xf32>, vector<64x128xf32>, vector<8x128xf32> -> vector<8x128xf32>
    %94 = vector.broadcast %1 : vector<1x128xf32> to vector<8x128xf32>
    %95 = arith.addf %93, %94 : vector<8x128xf32>
    %96 = arith.negf %95 : vector<8x128xf32>
    %97 = math.exp %96 : vector<8x128xf32>
    %cst_23 = arith.constant 1.000000e+00 : f32
    %98 = vector.broadcast %cst_23 : f32 to vector<8x128xf32>
    %99 = arith.addf %98, %97 : vector<8x128xf32>
    %100 = arith.divf %98, %99 : vector<8x128xf32>
    %101 = math.tanh %95 : vector<8x128xf32>
    %102 = vector.extract_strided_slice %100 {offsets = [0, 0], sizes = [8, 32], strides = [1, 1]} : vector<8x128xf32> to vector<8x32xf32>
    %103 = vector.extract_strided_slice %100 {offsets = [0, 32], sizes = [8, 32], strides = [1, 1]} : vector<8x128xf32> to vector<8x32xf32>
    %104 = vector.extract_strided_slice %101 {offsets = [0, 64], sizes = [8, 32], strides = [1, 1]} : vector<8x128xf32> to vector<8x32xf32>
    %105 = vector.extract_strided_slice %100 {offsets = [0, 96], sizes = [8, 32], strides = [1, 1]} : vector<8x128xf32> to vector<8x32xf32>
    %106 = arith.mulf %103, %75 : vector<8x32xf32>
    %107 = arith.mulf %102, %104 : vector<8x32xf32>
    %108 = arith.addf %106, %107 : vector<8x32xf32>
    %109 = math.tanh %108 : vector<8x32xf32>
    %110 = arith.mulf %105, %109 : vector<8x32xf32>
    %cst_24 = arith.constant dense<0.000000e+00> : vector<8x2xf32>
    %111 = tpu.matmul %110, %5, %cst_24 {dimension_numbers = #tpu.dot_dimension_numbers<[1], [0], [0], [1], [0, 0, 1, 1], [], []>} : vector<8x32xf32>, vector<32x2xf32>, vector<8x2xf32> -> vector<8x2xf32>
    %112 = vector.broadcast %6 : vector<1x2xf32> to vector<8x2xf32>
    %113 = arith.addf %111, %112 : vector<8x2xf32>
    %114 = vector.extract_strided_slice %113 {offsets = [0, 0], sizes = [8, 1], strides = [1, 1]} : vector<8x2xf32> to vector<8x1xf32>
    %115 = vector.extract_strided_slice %8 {offsets = [24, 0], sizes = [8, 1], strides = [1, 1]} : vector<64x1xf32> to vector<8x1xf32>
    %116 = arith.cmpf oeq, %115, %115 : vector<8x1xf32>
    %117 = arith.select %116, %115, %114 : vector<8x1xi1>, vector<8x1xf32>
    %118 = vector.extract_strided_slice %12 {offsets = [24, 0], sizes = [8, 32], strides = [1, 1]} : vector<64x32xf32> to vector<8x32xf32>
    %119 = vector.broadcast %117 : vector<8x1xf32> to vector<8x32xf32>
    %120 = vector.broadcast %3 : vector<1x32xf32> to vector<8x32xf32>
    %121 = arith.mulf %119, %120 : vector<8x32xf32>
    %122 = arith.addf %118, %121 : vector<8x32xf32>
    %cst_25 = arith.constant 0.000000e+00 : f32
    %123 = vector.broadcast %cst_25 : f32 to vector<8x32xf32>
    %124 = arith.maximumf %122, %123 : vector<8x32xf32>
    %125 = tpu.concatenate %124, %110 in 1 : vector<8x32xf32>, vector<8x32xf32> -> vector<8x64xf32>
    %cst_26 = arith.constant dense<0.000000e+00> : vector<8x128xf32>
    %126 = tpu.matmul %125, %0, %cst_26 {dimension_numbers = #tpu.dot_dimension_numbers<[1], [0], [0], [1], [0, 0, 1, 1], [], []>} : vector<8x64xf32>, vector<64x128xf32>, vector<8x128xf32> -> vector<8x128xf32>
    %127 = vector.broadcast %1 : vector<1x128xf32> to vector<8x128xf32>
    %128 = arith.addf %126, %127 : vector<8x128xf32>
    %129 = arith.negf %128 : vector<8x128xf32>
    %130 = math.exp %129 : vector<8x128xf32>
    %cst_27 = arith.constant 1.000000e+00 : f32
    %131 = vector.broadcast %cst_27 : f32 to vector<8x128xf32>
    %132 = arith.addf %131, %130 : vector<8x128xf32>
    %133 = arith.divf %131, %132 : vector<8x128xf32>
    %134 = math.tanh %128 : vector<8x128xf32>
    %135 = vector.extract_strided_slice %133 {offsets = [0, 0], sizes = [8, 32], strides = [1, 1]} : vector<8x128xf32> to vector<8x32xf32>
    %136 = vector.extract_strided_slice %133 {offsets = [0, 32], sizes = [8, 32], strides = [1, 1]} : vector<8x128xf32> to vector<8x32xf32>
    %137 = vector.extract_strided_slice %134 {offsets = [0, 64], sizes = [8, 32], strides = [1, 1]} : vector<8x128xf32> to vector<8x32xf32>
    %138 = vector.extract_strided_slice %133 {offsets = [0, 96], sizes = [8, 32], strides = [1, 1]} : vector<8x128xf32> to vector<8x32xf32>
    %139 = arith.mulf %136, %108 : vector<8x32xf32>
    %140 = arith.mulf %135, %137 : vector<8x32xf32>
    %141 = arith.addf %139, %140 : vector<8x32xf32>
    %142 = math.tanh %141 : vector<8x32xf32>
    %143 = arith.mulf %138, %142 : vector<8x32xf32>
    %cst_28 = arith.constant dense<0.000000e+00> : vector<8x2xf32>
    %144 = tpu.matmul %143, %5, %cst_28 {dimension_numbers = #tpu.dot_dimension_numbers<[1], [0], [0], [1], [0, 0, 1, 1], [], []>} : vector<8x32xf32>, vector<32x2xf32>, vector<8x2xf32> -> vector<8x2xf32>
    %145 = vector.broadcast %6 : vector<1x2xf32> to vector<8x2xf32>
    %146 = arith.addf %144, %145 : vector<8x2xf32>
    %147 = vector.extract_strided_slice %146 {offsets = [0, 0], sizes = [8, 1], strides = [1, 1]} : vector<8x2xf32> to vector<8x1xf32>
    %148 = vector.extract_strided_slice %8 {offsets = [32, 0], sizes = [8, 1], strides = [1, 1]} : vector<64x1xf32> to vector<8x1xf32>
    %149 = arith.cmpf oeq, %148, %148 : vector<8x1xf32>
    %150 = arith.select %149, %148, %147 : vector<8x1xi1>, vector<8x1xf32>
    %151 = vector.extract_strided_slice %12 {offsets = [32, 0], sizes = [8, 32], strides = [1, 1]} : vector<64x32xf32> to vector<8x32xf32>
    %152 = vector.broadcast %150 : vector<8x1xf32> to vector<8x32xf32>
    %153 = vector.broadcast %3 : vector<1x32xf32> to vector<8x32xf32>
    %154 = arith.mulf %152, %153 : vector<8x32xf32>
    %155 = arith.addf %151, %154 : vector<8x32xf32>
    %cst_29 = arith.constant 0.000000e+00 : f32
    %156 = vector.broadcast %cst_29 : f32 to vector<8x32xf32>
    %157 = arith.maximumf %155, %156 : vector<8x32xf32>
    %158 = tpu.concatenate %157, %143 in 1 : vector<8x32xf32>, vector<8x32xf32> -> vector<8x64xf32>
    %cst_30 = arith.constant dense<0.000000e+00> : vector<8x128xf32>
    %159 = tpu.matmul %158, %0, %cst_30 {dimension_numbers = #tpu.dot_dimension_numbers<[1], [0], [0], [1], [0, 0, 1, 1], [], []>} : vector<8x64xf32>, vector<64x128xf32>, vector<8x128xf32> -> vector<8x128xf32>
    %160 = vector.broadcast %1 : vector<1x128xf32> to vector<8x128xf32>
    %161 = arith.addf %159, %160 : vector<8x128xf32>
    %162 = arith.negf %161 : vector<8x128xf32>
    %163 = math.exp %162 : vector<8x128xf32>
    %cst_31 = arith.constant 1.000000e+00 : f32
    %164 = vector.broadcast %cst_31 : f32 to vector<8x128xf32>
    %165 = arith.addf %164, %163 : vector<8x128xf32>
    %166 = arith.divf %164, %165 : vector<8x128xf32>
    %167 = math.tanh %161 : vector<8x128xf32>
    %168 = vector.extract_strided_slice %166 {offsets = [0, 0], sizes = [8, 32], strides = [1, 1]} : vector<8x128xf32> to vector<8x32xf32>
    %169 = vector.extract_strided_slice %166 {offsets = [0, 32], sizes = [8, 32], strides = [1, 1]} : vector<8x128xf32> to vector<8x32xf32>
    %170 = vector.extract_strided_slice %167 {offsets = [0, 64], sizes = [8, 32], strides = [1, 1]} : vector<8x128xf32> to vector<8x32xf32>
    %171 = vector.extract_strided_slice %166 {offsets = [0, 96], sizes = [8, 32], strides = [1, 1]} : vector<8x128xf32> to vector<8x32xf32>
    %172 = arith.mulf %169, %141 : vector<8x32xf32>
    %173 = arith.mulf %168, %170 : vector<8x32xf32>
    %174 = arith.addf %172, %173 : vector<8x32xf32>
    %175 = math.tanh %174 : vector<8x32xf32>
    %176 = arith.mulf %171, %175 : vector<8x32xf32>
    %cst_32 = arith.constant dense<0.000000e+00> : vector<8x2xf32>
    %177 = tpu.matmul %176, %5, %cst_32 {dimension_numbers = #tpu.dot_dimension_numbers<[1], [0], [0], [1], [0, 0, 1, 1], [], []>} : vector<8x32xf32>, vector<32x2xf32>, vector<8x2xf32> -> vector<8x2xf32>
    %178 = vector.broadcast %6 : vector<1x2xf32> to vector<8x2xf32>
    %179 = arith.addf %177, %178 : vector<8x2xf32>
    %180 = vector.extract_strided_slice %179 {offsets = [0, 0], sizes = [8, 1], strides = [1, 1]} : vector<8x2xf32> to vector<8x1xf32>
    %181 = vector.extract_strided_slice %8 {offsets = [40, 0], sizes = [8, 1], strides = [1, 1]} : vector<64x1xf32> to vector<8x1xf32>
    %182 = arith.cmpf oeq, %181, %181 : vector<8x1xf32>
    %183 = arith.select %182, %181, %180 : vector<8x1xi1>, vector<8x1xf32>
    %184 = vector.extract_strided_slice %12 {offsets = [40, 0], sizes = [8, 32], strides = [1, 1]} : vector<64x32xf32> to vector<8x32xf32>
    %185 = vector.broadcast %183 : vector<8x1xf32> to vector<8x32xf32>
    %186 = vector.broadcast %3 : vector<1x32xf32> to vector<8x32xf32>
    %187 = arith.mulf %185, %186 : vector<8x32xf32>
    %188 = arith.addf %184, %187 : vector<8x32xf32>
    %cst_33 = arith.constant 0.000000e+00 : f32
    %189 = vector.broadcast %cst_33 : f32 to vector<8x32xf32>
    %190 = arith.maximumf %188, %189 : vector<8x32xf32>
    %191 = tpu.concatenate %190, %176 in 1 : vector<8x32xf32>, vector<8x32xf32> -> vector<8x64xf32>
    %cst_34 = arith.constant dense<0.000000e+00> : vector<8x128xf32>
    %192 = tpu.matmul %191, %0, %cst_34 {dimension_numbers = #tpu.dot_dimension_numbers<[1], [0], [0], [1], [0, 0, 1, 1], [], []>} : vector<8x64xf32>, vector<64x128xf32>, vector<8x128xf32> -> vector<8x128xf32>
    %193 = vector.broadcast %1 : vector<1x128xf32> to vector<8x128xf32>
    %194 = arith.addf %192, %193 : vector<8x128xf32>
    %195 = arith.negf %194 : vector<8x128xf32>
    %196 = math.exp %195 : vector<8x128xf32>
    %cst_35 = arith.constant 1.000000e+00 : f32
    %197 = vector.broadcast %cst_35 : f32 to vector<8x128xf32>
    %198 = arith.addf %197, %196 : vector<8x128xf32>
    %199 = arith.divf %197, %198 : vector<8x128xf32>
    %200 = math.tanh %194 : vector<8x128xf32>
    %201 = vector.extract_strided_slice %199 {offsets = [0, 0], sizes = [8, 32], strides = [1, 1]} : vector<8x128xf32> to vector<8x32xf32>
    %202 = vector.extract_strided_slice %199 {offsets = [0, 32], sizes = [8, 32], strides = [1, 1]} : vector<8x128xf32> to vector<8x32xf32>
    %203 = vector.extract_strided_slice %200 {offsets = [0, 64], sizes = [8, 32], strides = [1, 1]} : vector<8x128xf32> to vector<8x32xf32>
    %204 = vector.extract_strided_slice %199 {offsets = [0, 96], sizes = [8, 32], strides = [1, 1]} : vector<8x128xf32> to vector<8x32xf32>
    %205 = arith.mulf %202, %174 : vector<8x32xf32>
    %206 = arith.mulf %201, %203 : vector<8x32xf32>
    %207 = arith.addf %205, %206 : vector<8x32xf32>
    %208 = math.tanh %207 : vector<8x32xf32>
    %209 = arith.mulf %204, %208 : vector<8x32xf32>
    %cst_36 = arith.constant dense<0.000000e+00> : vector<8x2xf32>
    %210 = tpu.matmul %209, %5, %cst_36 {dimension_numbers = #tpu.dot_dimension_numbers<[1], [0], [0], [1], [0, 0, 1, 1], [], []>} : vector<8x32xf32>, vector<32x2xf32>, vector<8x2xf32> -> vector<8x2xf32>
    %211 = vector.broadcast %6 : vector<1x2xf32> to vector<8x2xf32>
    %212 = arith.addf %210, %211 : vector<8x2xf32>
    %213 = vector.extract_strided_slice %212 {offsets = [0, 0], sizes = [8, 1], strides = [1, 1]} : vector<8x2xf32> to vector<8x1xf32>
    %214 = vector.extract_strided_slice %8 {offsets = [48, 0], sizes = [8, 1], strides = [1, 1]} : vector<64x1xf32> to vector<8x1xf32>
    %215 = arith.cmpf oeq, %214, %214 : vector<8x1xf32>
    %216 = arith.select %215, %214, %213 : vector<8x1xi1>, vector<8x1xf32>
    %217 = vector.extract_strided_slice %12 {offsets = [48, 0], sizes = [8, 32], strides = [1, 1]} : vector<64x32xf32> to vector<8x32xf32>
    %218 = vector.broadcast %216 : vector<8x1xf32> to vector<8x32xf32>
    %219 = vector.broadcast %3 : vector<1x32xf32> to vector<8x32xf32>
    %220 = arith.mulf %218, %219 : vector<8x32xf32>
    %221 = arith.addf %217, %220 : vector<8x32xf32>
    %cst_37 = arith.constant 0.000000e+00 : f32
    %222 = vector.broadcast %cst_37 : f32 to vector<8x32xf32>
    %223 = arith.maximumf %221, %222 : vector<8x32xf32>
    %224 = tpu.concatenate %223, %209 in 1 : vector<8x32xf32>, vector<8x32xf32> -> vector<8x64xf32>
    %cst_38 = arith.constant dense<0.000000e+00> : vector<8x128xf32>
    %225 = tpu.matmul %224, %0, %cst_38 {dimension_numbers = #tpu.dot_dimension_numbers<[1], [0], [0], [1], [0, 0, 1, 1], [], []>} : vector<8x64xf32>, vector<64x128xf32>, vector<8x128xf32> -> vector<8x128xf32>
    %226 = vector.broadcast %1 : vector<1x128xf32> to vector<8x128xf32>
    %227 = arith.addf %225, %226 : vector<8x128xf32>
    %228 = arith.negf %227 : vector<8x128xf32>
    %229 = math.exp %228 : vector<8x128xf32>
    %cst_39 = arith.constant 1.000000e+00 : f32
    %230 = vector.broadcast %cst_39 : f32 to vector<8x128xf32>
    %231 = arith.addf %230, %229 : vector<8x128xf32>
    %232 = arith.divf %230, %231 : vector<8x128xf32>
    %233 = math.tanh %227 : vector<8x128xf32>
    %234 = vector.extract_strided_slice %232 {offsets = [0, 0], sizes = [8, 32], strides = [1, 1]} : vector<8x128xf32> to vector<8x32xf32>
    %235 = vector.extract_strided_slice %232 {offsets = [0, 32], sizes = [8, 32], strides = [1, 1]} : vector<8x128xf32> to vector<8x32xf32>
    %236 = vector.extract_strided_slice %233 {offsets = [0, 64], sizes = [8, 32], strides = [1, 1]} : vector<8x128xf32> to vector<8x32xf32>
    %237 = vector.extract_strided_slice %232 {offsets = [0, 96], sizes = [8, 32], strides = [1, 1]} : vector<8x128xf32> to vector<8x32xf32>
    %238 = arith.mulf %235, %207 : vector<8x32xf32>
    %239 = arith.mulf %234, %236 : vector<8x32xf32>
    %240 = arith.addf %238, %239 : vector<8x32xf32>
    %241 = math.tanh %240 : vector<8x32xf32>
    %242 = arith.mulf %237, %241 : vector<8x32xf32>
    %cst_40 = arith.constant dense<0.000000e+00> : vector<8x2xf32>
    %243 = tpu.matmul %242, %5, %cst_40 {dimension_numbers = #tpu.dot_dimension_numbers<[1], [0], [0], [1], [0, 0, 1, 1], [], []>} : vector<8x32xf32>, vector<32x2xf32>, vector<8x2xf32> -> vector<8x2xf32>
    %244 = vector.broadcast %6 : vector<1x2xf32> to vector<8x2xf32>
    %245 = arith.addf %243, %244 : vector<8x2xf32>
    %246 = vector.extract_strided_slice %245 {offsets = [0, 0], sizes = [8, 1], strides = [1, 1]} : vector<8x2xf32> to vector<8x1xf32>
    %247 = vector.extract_strided_slice %8 {offsets = [56, 0], sizes = [8, 1], strides = [1, 1]} : vector<64x1xf32> to vector<8x1xf32>
    %248 = arith.cmpf oeq, %247, %247 : vector<8x1xf32>
    %249 = arith.select %248, %247, %246 : vector<8x1xi1>, vector<8x1xf32>
    %250 = vector.extract_strided_slice %12 {offsets = [56, 0], sizes = [8, 32], strides = [1, 1]} : vector<64x32xf32> to vector<8x32xf32>
    %251 = vector.broadcast %249 : vector<8x1xf32> to vector<8x32xf32>
    %252 = vector.broadcast %3 : vector<1x32xf32> to vector<8x32xf32>
    %253 = arith.mulf %251, %252 : vector<8x32xf32>
    %254 = arith.addf %250, %253 : vector<8x32xf32>
    %cst_41 = arith.constant 0.000000e+00 : f32
    %255 = vector.broadcast %cst_41 : f32 to vector<8x32xf32>
    %256 = arith.maximumf %254, %255 : vector<8x32xf32>
    %257 = tpu.concatenate %256, %242 in 1 : vector<8x32xf32>, vector<8x32xf32> -> vector<8x64xf32>
    %cst_42 = arith.constant dense<0.000000e+00> : vector<8x128xf32>
    %258 = tpu.matmul %257, %0, %cst_42 {dimension_numbers = #tpu.dot_dimension_numbers<[1], [0], [0], [1], [0, 0, 1, 1], [], []>} : vector<8x64xf32>, vector<64x128xf32>, vector<8x128xf32> -> vector<8x128xf32>
    %259 = vector.broadcast %1 : vector<1x128xf32> to vector<8x128xf32>
    %260 = arith.addf %258, %259 : vector<8x128xf32>
    %261 = arith.negf %260 : vector<8x128xf32>
    %262 = math.exp %261 : vector<8x128xf32>
    %cst_43 = arith.constant 1.000000e+00 : f32
    %263 = vector.broadcast %cst_43 : f32 to vector<8x128xf32>
    %264 = arith.addf %263, %262 : vector<8x128xf32>
    %265 = arith.divf %263, %264 : vector<8x128xf32>
    %266 = math.tanh %260 : vector<8x128xf32>
    %267 = vector.extract_strided_slice %265 {offsets = [0, 0], sizes = [8, 32], strides = [1, 1]} : vector<8x128xf32> to vector<8x32xf32>
    %268 = vector.extract_strided_slice %265 {offsets = [0, 32], sizes = [8, 32], strides = [1, 1]} : vector<8x128xf32> to vector<8x32xf32>
    %269 = vector.extract_strided_slice %266 {offsets = [0, 64], sizes = [8, 32], strides = [1, 1]} : vector<8x128xf32> to vector<8x32xf32>
    %270 = vector.extract_strided_slice %265 {offsets = [0, 96], sizes = [8, 32], strides = [1, 1]} : vector<8x128xf32> to vector<8x32xf32>
    %271 = arith.mulf %268, %240 : vector<8x32xf32>
    %272 = arith.mulf %267, %269 : vector<8x32xf32>
    %273 = arith.addf %271, %272 : vector<8x32xf32>
    %274 = math.tanh %273 : vector<8x32xf32>
    %275 = arith.mulf %270, %274 : vector<8x32xf32>
    %cst_44 = arith.constant dense<0.000000e+00> : vector<8x2xf32>
    %276 = tpu.matmul %275, %5, %cst_44 {dimension_numbers = #tpu.dot_dimension_numbers<[1], [0], [0], [1], [0, 0, 1, 1], [], []>} : vector<8x32xf32>, vector<32x2xf32>, vector<8x2xf32> -> vector<8x2xf32>
    %277 = vector.broadcast %6 : vector<1x2xf32> to vector<8x2xf32>
    %278 = arith.addf %276, %277 : vector<8x2xf32>
    %279 = vector.shape_cast %47 : vector<8x2xf32> to vector<1x8x2xf32>
    %280 = vector.shape_cast %80 : vector<8x2xf32> to vector<1x8x2xf32>
    %281 = vector.shape_cast %113 : vector<8x2xf32> to vector<1x8x2xf32>
    %282 = vector.shape_cast %146 : vector<8x2xf32> to vector<1x8x2xf32>
    %283 = vector.shape_cast %179 : vector<8x2xf32> to vector<1x8x2xf32>
    %284 = vector.shape_cast %212 : vector<8x2xf32> to vector<1x8x2xf32>
    %285 = vector.shape_cast %245 : vector<8x2xf32> to vector<1x8x2xf32>
    %286 = vector.shape_cast %278 : vector<8x2xf32> to vector<1x8x2xf32>
    %287 = tpu.concatenate %279, %280, %281, %282, %283, %284, %285, %286 in 0 : vector<1x8x2xf32>, vector<1x8x2xf32>, vector<1x8x2xf32>, vector<1x8x2xf32>, vector<1x8x2xf32>, vector<1x8x2xf32>, vector<1x8x2xf32>, vector<1x8x2xf32> -> vector<8x8x2xf32>
    %c0_45 = arith.constant 0 : index
    %c0_46 = arith.constant 0 : index
    %c0_47 = arith.constant 0 : index
    %288 = vector.load %arg3[%c0_45, %c0_46, %c0_47] : memref<8x8x2xf32, #tpu.memory_space<vmem>>, vector<8x8x2xf32>
    tpu.vector_store %arg3[%c0_45, %c0_46, %c0_47], %287 {strides = array<i32>} : memref<8x8x2xf32, #tpu.memory_space<vmem>>, vector<8x8x2xf32>,
    return
  }
}

</mosaic_0001>

<bundles_post_ra>
// kernel: tpu_custom_call.1
= control target key start
LH: loop header
LB: loop body
LE: loop exit
PB: predicated region body
PF: predicated region fallthrough
CT: control target
= control target key end

     0   :  { %8 = vsyncpa [#allocation3], 0  ;;  %s1099_s15 = smov [#allocation2]   ;;  %s1100_s17 = smov 128   ;;  %s1462_s0 = inlined_call_operand.vmem [shape: f32[64,5], index: 0, kind: input, shape index: {}]   ;;  %s1463_s1 = inlined_call_operand.vmem [shape: f32[65,128], index: 1, kind: input, shape index: {}]   ;;  %s1464_s2 = inlined_call_operand.hbm [shape: f32[39,128], index: 2, kind: input, shape index: {}]   ;;  %s1465_s3 = inlined_call_operand.vmem [shape: f32[8,8,2], index: 3, kind: output, shape index: {}]  }
   0x1   :  { %s17_s14 = sshll.u32 %s1464_s2, 4  ;;  %s19_s16 = sshll.u32 %s1099_s15, 4  ;;  %s18_s14 = int_to_ptr.hbm [resolvable:$true] %s17_s14  ;;  %s20_s16 = int_to_ptr.vmem [resolvable:$true] %s19_s16 }
   0x2   :  { %s1101_s18 = smov 8  }
   0x3   :  { %25 = dma.hbm_to_vmem [thread:$0]  %s18_s14, 640, %s20_s16, [#allocation3], %s1100_s17, %s1100_s17, %s1101_s18  }
   0x4   :  { %1097 = dma.done.wait [#allocation3], 640  }
   0x5   :  { %1098 = vsyncadd [#allocation3], 4294966656  ;;  %v1102_v0 = vmov 4   ;;  %vm81_vm0 = vcmask 1043456   ;;  %vm56_vm1 = vcmask 31744   ;;  %v47_v2 = vld [vmem:[%s1462_s0] sm:$0xff] }
   0x6   :  { %1002 = vset.pattern.permute.xlu0 %v1102_v0  ;;  %1003 = vset.pattern.permute.xlu1 %v1102_v0  ;;  %v39_v1 = vld [vmem:[#allocation2] sm:$0xf]  ;;  %v1135_v3 = vld [vmem:[%s1463_s1 + $0x38] sm:$0xff]  ;;  %vm126_vm2 = vcmp.eq.f32.partialorder %v47_v2, %v47_v2  ;;  %v1141_v4 = vld [vmem:[%s1463_s1 + $0x30] sm:$0xff]  ;;  %vm137_vm3 = vcmask 261120   ;;  %vm140_vm4 = vcmask 523264  }
   0x7   :  { %1004 = vset.pattern.permute.xlu2 %v1102_v0  ;;  %962 = vmatpush.msk.msra.mxu0 %vm81_vm0, %v39_v1  ;;  %v127_v5 = vsel %vm126_vm2, %v47_v2, 0.0  ;;  %v1147_v6 = vld [vmem:[%s1463_s1 + $0x28] sm:$0xff]  ;;  %v1154_v7 = vld [vmem:[%s1463_s1 + $0x20] sm:$0xff]  ;;  %v1164_v8 = vld [vmem:[%s1463_s1 + $0x18] sm:$0xff]  ;;  %s1103_s11 = smov 64   ;;  %vm948_vm9 = vcmask 15360  }
   0x8   :  { %152 = vmatpush.msra.mxu1 %v1135_v3  ;;  %963 = vmatmul.msk.f32.vlgmr.msra.gmra.mxu0 %vm56_vm1, %v47_v2  ;;  %v1171_v9 = vld [vmem:[%s1463_s1 + $0x10] sm:$0xff]  ;;  %v1178_v10 = vld [vmem:[%s1463_s1 + $0x8] sm:$0xff]  ;;  %v1184_v11 = vld [vmem:[%s1463_s1] sm:$0xff]  ;;  %s1105_s16 = smov 4  }
   0x9   :  { %256 = vmatpush.msra.mxu3 %v1135_v3  ;;  %130 = vperm.xlu0 %1002, %v127_v5   ;;  %v1205_v12 = vld [vmem:[#allocation2 + $0x4] ss:$0 sm:$0xff]  ;;  %v1207_v14 = vld [vmem:[#allocation2 + $0x5] ss:$0 sm:$0xff]  ;;  %v1224_v21 = vld [vmem:[%s1463_s1 + $0x40] ss:$0 sm:$0xff] }
   0xa   :  { %153 = vmatpush.msra.mxu1 %v1141_v4  ;;  %s1104_s1 = smov 32   ;;  %v1233_v44 = vld [vmem:[#allocation2 + $0x1e] sm:$0xff]  ;;  %v1235_v45 = vld [vmem:[#allocation2 + $0x16] sm:$0xff]  ;;  %v1238_v46 = vld [vmem:[#allocation2 + $0xe] sm:$0xff] }
   0xb   :  { %257 = vmatpush.msra.mxu3 %v1141_v4  ;;  %219 = vmatpush.msra.mxu2 %v1233_v44  ;;  %v1241_v47 = vld [vmem:[#allocation2 + $0x6] sm:$0xff] }
   0xc   :  { %154 = vmatpush.msra.mxu1 %v1147_v6  ;;  %v48_v51 = vld [vmem:[%s1462_s0 + $0x8] sm:$0xff]  ;;  %v1260_v52 = vld [vmem:[#allocation2 + $0x26] ss:$0 sm:$0xff] }
   0xd   :  { %258 = vmatpush.msra.mxu3 %v1147_v6  ;;  %220 = vmatpush.msra.mxu2 %v1235_v45  ;;  %vm227_vm10 = vcmp.eq.f32.partialorder %v48_v51, %v48_v51 }
   0xe   :  { %155 = vmatpush.msra.mxu1 %v1154_v7 }
   0xf   :  { %259 = vmatpush.msra.mxu3 %v1154_v7  ;;  %221 = vmatpush.msra.mxu2 %v1238_v46 }
  0x10   :  { %156 = vmatpush.msra.mxu1 %v1164_v8  ;;  %964 = vmatmul.msk.f32.gmra.mxu0 %vm56_vm1, %v48_v51 }
  0x11   :  { %260 = vmatpush.msra.mxu3 %v1164_v8  ;;  %222 = vmatpush.msra.mxu2 %v1241_v47 }
  0x12   :  { %157 = vmatpush.msra.mxu1 %v1171_v9 }
  0x13   :  { %261 = vmatpush.msra.mxu3 %v1171_v9  ;;  %322 = vmatpush.msrb.mxu2 %v1233_v44 }
  0x14   :  { %158 = vmatpush.msra.mxu1 %v1178_v10 }
  0x15   :  { %262 = vmatpush.msra.mxu3 %v1178_v10  ;;  %323 = vmatpush.msrb.mxu2 %v1235_v45 }
  0x16   :  { %159 = vmatpush.msra.mxu1 %v1184_v11 }
  0x17   :  { %263 = vmatpush.msra.mxu3 %v1184_v11  ;;  %324 = vmatpush.msrb.mxu2 %v1238_v46 }
  0x18   :  { %359 = vmatpush.msrb.mxu1 %v1135_v3 }
  0x19   :  { %462 = vmatpush.msrb.mxu3 %v1135_v3  ;;  %325 = vmatpush.msrb.mxu2 %v1241_v47 }
  0x1a   :  { %360 = vmatpush.msrb.mxu1 %v1141_v4 }
  0x1b   :  { %463 = vmatpush.msrb.mxu3 %v1141_v4 }
  0x1c   :  { %361 = vmatpush.msrb.mxu1 %v1147_v6 }
  0x1d   :  { %464 = vmatpush.msrb.mxu3 %v1147_v6 }
  0x1e   :  { %362 = vmatpush.msrb.mxu1 %v1154_v7 }
  0x1f   :  { %465 = vmatpush.msrb.mxu3 %v1154_v7 }
  0x20   :  { %363 = vmatpush.msrb.mxu1 %v1164_v8 }
  0x21   :  { %466 = vmatpush.msrb.mxu3 %v1164_v8 }
  0x22   :  { %364 = vmatpush.msrb.mxu1 %v1171_v9 }
  0x23   :  { %467 = vmatpush.msrb.mxu3 %v1171_v9 }
  0x24   :  { %365 = vmatpush.msrb.mxu1 %v1178_v10 }
  0x25   :  { %468 = vmatpush.msrb.mxu3 %v1178_v10 }
  0x26   :  { %366 = vmatpush.msrb.mxu1 %v1184_v11 }
  0x27   :  { %469 = vmatpush.msrb.mxu3 %v1184_v11 }
  0x7b   :  { %v131_v13 = vpop.permute.xlu0 %130 }
  0x7c   :  { %v134_v15 = vmul.f32 %v1205_v12, %v131_v13 }
  0x85   :  { %v102_v16 = vpop.f32.mrf.mxu0 }
  0x86   :  { %v103_v17 = vadd.f32 %v1207_v14, %v102_v16 }
  0x88   :  { %v135_v18 = vadd.f32 %v134_v15, %v103_v17 }
  0x8a   :  { %v136_v19 = vmax.f32 %v135_v18, 0.0 }
  0x8c   :  { %v138_v20 = vsel %vm137_vm3, %v136_v19, 0.0 }
  0x8d   :  { %971 = vmatmul.msk.f32.vlgmr.msra.gmra.mxu1 %vm140_vm4, %v138_v20  ;;  %v105_v57 = vpop.f32.mrf.mxu0 }
  0x8e   :  { %565 = vmatpush.msra.mxu1 %v1135_v3  ;;  %v106_v58 = vadd.f32 %v1207_v14, %v105_v57 }
  0x90   :  { %566 = vmatpush.msra.mxu1 %v1141_v4 }
  0x92   :  { %567 = vmatpush.msra.mxu1 %v1147_v6 }
  0x94   :  { %568 = vmatpush.msra.mxu1 %v1154_v7 }
  0x96   :  { %569 = vmatpush.msra.mxu1 %v1164_v8 }
  0x98   :  { %570 = vmatpush.msra.mxu1 %v1171_v9 }
  0x9a   :  { %571 = vmatpush.msra.mxu1 %v1178_v10 }
  0x9c   :  { %572 = vmatpush.msra.mxu1 %v1184_v11 }
 0x10a   :  { %v161_v22 = vpop.f32.mrf.mxu1 }
 0x10b   :  { %v162_v23 = vadd.f32 %v1224_v21, %v161_v22 }
 0x10d   :  { %1009 = vtanh.f32 %v162_v23  ;;  %v972_v25 = vmul.f32 -1.442695, %v162_v23 }
 0x10f   :  { %1011 = vpow2.f32 %v972_v25 }
 0x113   :  { %v1010_v24 = vpop.eup %1009 }
 0x114   :  { %186 = vrot.lane.b32.xlu0 %v1010_v24, %s1103_s11 }
 0x115   :  { %v1012_v26 = vpop.eup %1011 }
 0x116   :  { %v167_v27 = vadd.f32 1.0, %v1012_v26 }
 0x118   :  { %1013 = vrcp.f32 %v167_v27  ;;  %v179_v33 = vand.u32 2147483648, %v167_v27  ;;  %vm173_vm6 = vweird.f32 %v167_v27  ;;  %v177_v34 = vand.u32 2147483647, %v167_v27 }
 0x11a   :  { %v180_v36 = vor.u32 1.1754944e-38, %v179_v33  ;;  %vm178_vm8 = vcmp.eq.f32.partialorder %v177_v34, 8.507059e+37 }
 0x11e   :  { %v1014_v28 = vpop.eup %1013 }
 0x11f   :  { %v169_v29 = vmul.f32 %v1014_v28, %v167_v27  ;;  %vm174_vm5 = vweird.f32 %v1014_v28 }
 0x120   :  { %vm175_vm7 = vmor %vm173_vm6, %vm174_vm5 }
 0x121   :  { %v170_v30 = vsub.f32 1.0, %v169_v29 }
 0x123   :  { %v171_v31 = vmul.f32 %v1014_v28, %v170_v30 }
 0x125   :  { %v172_v32 = vadd.f32 %v1014_v28, %v171_v31 }
 0x127   :  { %v176_v35 = vsel %vm175_vm7, %v1014_v28, %v172_v32 }
 0x128   :  { %v181_v38 = vsel %vm178_vm8, %v180_v36, %v176_v35 }
 0x129   :  { %v184_v40 = vmul.f32 0.0, %v181_v38 }
 0x186   :  { %v187_v37 = vpop.permute.xlu0 %186 }
 0x187   :  { %v189_v39 = vmul.f32 %v187_v37, %v181_v38  ;;  %v49_v37 = vld [vmem:[%s1462_s0 + $0x10] sm:$0xff] }
 0x188   :  { %965 = vmatmul.msk.f32.gmra.mxu0 %vm56_vm1, %v49_v37  ;;  %vm330_vm15 = vcmp.eq.f32.partialorder %v49_v37, %v49_v37 }
 0x189   :  { %191 = vrot.lane.b32.xlu1 %v189_v39, %s1104_s1 }
 0x1fb   :  { %v192_v41 = vpop.permute.xlu1 %191 }
 0x1fc   :  { %v1229_v42 = vadd.f32 %v192_v41, %v184_v40 }
 0x1fe   :  { %1015 = vtanh.f32 %v1229_v42 }
 0x204   :  { %v1016_v43 = vpop.eup %1015 }
 0x205   :  { %197 = vrot.lane.b32.xlu1 %v1016_v43, %s1103_s11 }
 0x277   :  { %v198_v48 = vpop.permute.xlu1 %197 }
 0x278   :  { %v200_v49 = vmul.f32 %v198_v48, %v181_v38 }
 0x27a   :  { %241 = vrot.lane.b32.xlu1 %v200_v49, %s1103_s11  ;;  %203 = vrot.lane.b32.xlu2 %v200_v49, %s1104_s1 }
 0x2d4   :  { %v204_v50 = vpop.permute.xlu2 %203 }
 0x2d5   :  { %973 = vmatmul.msk.f32.vlgmr.msra.gmra.mxu2 %vm137_vm3, %v204_v50 }
 0x2d6   :  { %425 = vmatpush.msra.mxu2 %v1233_v44 }
 0x2d8   :  { %426 = vmatpush.msra.mxu2 %v1235_v45 }
 0x2da   :  { %427 = vmatpush.msra.mxu2 %v1238_v46 }
 0x2dc   :  { %428 = vmatpush.msra.mxu2 %v1241_v47 }
 0x2ec   :  { %v242_v63 = vpop.permute.xlu1 %241 }
 0x358   :  { %v224_v53 = vpop.f32.mrf.mxu2 }
 0x359   :  { %v225_v54 = vadd.f32 %v1260_v52, %v224_v53 }
 0x35b   :  { %949 = vst.msk [vmem:[%s1465_s3] sm:$0xff] %vm948_vm9, %v225_v54  ;;  %229 = vrot.lane.b32.xlu2 %v225_v54, %s1105_s16 }
 0x3b5   :  { %v230_v55 = vpop.permute.xlu2 %229 }
 0x3b6   :  { %v232_v56 = vsel %vm227_vm10, %v48_v51, %v230_v55 }
 0x3b7   :  { %235 = vperm.xlu0 %1002, %v232_v56  }
 0x429   :  { %v236_v59 = vpop.permute.xlu0 %235 }
 0x42a   :  { %v238_v60 = vmul.f32 %v1205_v12, %v236_v59 }
 0x42c   :  { %v239_v61 = vadd.f32 %v238_v60, %v106_v58 }
 0x42e   :  { %v240_v62 = vmax.f32 %v239_v61, 0.0 }
 0x430   :  { %v244_v0 = vsel %vm137_vm3, %v240_v62, %v242_v63 }
 0x431   :  { %974 = vmatmul.msk.f32.vlgmr.msra.gmra.mxu3 %vm140_vm4, %v244_v0 }
 0x432   :  { %668 = vmatpush.msra.mxu3 %v1135_v3 }
 0x434   :  { %669 = vmatpush.msra.mxu3 %v1141_v4 }
 0x436   :  { %670 = vmatpush.msra.mxu3 %v1147_v6 }
 0x438   :  { %671 = vmatpush.msra.mxu3 %v1154_v7 }
 0x43a   :  { %672 = vmatpush.msra.mxu3 %v1164_v8 }
 0x43c   :  { %673 = vmatpush.msra.mxu3 %v1171_v9 }
 0x43e   :  { %674 = vmatpush.msra.mxu3 %v1178_v10 }
 0x440   :  { %675 = vmatpush.msra.mxu3 %v1184_v11 }
 0x4b4   :  { %v265_v1 = vpop.f32.mrf.mxu3 }
 0x4b5   :  { %v266_v2 = vadd.f32 %v1224_v21, %v265_v1 }
 0x4b7   :  { %1017 = vtanh.f32 %v266_v2  ;;  %v975_v13 = vmul.f32 -1.442695, %v266_v2 }
 0x4b9   :  { %1019 = vpow2.f32 %v975_v13 }
 0x4bd   :  { %v1018_v5 = vpop.eup %1017 }
 0x4be   :  { %290 = vrot.lane.b32.xlu2 %v1018_v5, %s1103_s11 }
 0x4bf   :  { %v1020_v15 = vpop.eup %1019 }
 0x4c0   :  { %v271_v16 = vadd.f32 1.0, %v1020_v15 }
 0x4c2   :  { %1021 = vrcp.f32 %v271_v16  ;;  %v283_v23 = vand.u32 2147483648, %v271_v16  ;;  %vm277_vm12 = vweird.f32 %v271_v16  ;;  %v281_v24 = vand.u32 2147483647, %v271_v16 }
 0x4c4   :  { %v284_v26 = vor.u32 1.1754944e-38, %v283_v23  ;;  %vm282_vm14 = vcmp.eq.f32.partialorder %v281_v24, 8.507059e+37 }
 0x4c8   :  { %v1022_v17 = vpop.eup %1021 }
 0x4c9   :  { %v273_v18 = vmul.f32 %v1022_v17, %v271_v16  ;;  %vm278_vm11 = vweird.f32 %v1022_v17 }
 0x4ca   :  { %vm279_vm13 = vmor %vm277_vm12, %vm278_vm11 }
 0x4cb   :  { %v274_v19 = vsub.f32 1.0, %v273_v18 }
 0x4cd   :  { %v275_v20 = vmul.f32 %v1022_v17, %v274_v19 }
 0x4cf   :  { %v276_v22 = vadd.f32 %v1022_v17, %v275_v20 }
 0x4d1   :  { %v280_v25 = vsel %vm279_vm13, %v1022_v17, %v276_v22 }
 0x4d2   :  { %v285_v28 = vsel %vm282_vm14, %v284_v26, %v280_v25 }
 0x4d3   :  { %v288_v30 = vmul.f32 %v285_v28, %v1229_v42  ;;  %v108_v42 = vpop.f32.mrf.mxu0 }
 0x4d4   :  { %v109_v43 = vadd.f32 %v1207_v14, %v108_v42 }
 0x518   :  { %v291_v27 = vpop.permute.xlu2 %290 }
 0x519   :  { %v293_v29 = vmul.f32 %v291_v27, %v285_v28  ;;  %v50_v27 = vld [vmem:[%s1462_s0 + $0x18] sm:$0xff] }
 0x51a   :  { %966 = vmatmul.msk.f32.gmra.mxu0 %vm56_vm1, %v50_v27  ;;  %vm433_vm7 = vcmp.eq.f32.partialorder %v50_v27, %v50_v27 }
 0x51b   :  { %295 = vrot.lane.b32.xlu0 %v293_v29, %s1104_s1 }
 0x58d   :  { %v296_v31 = vpop.permute.xlu0 %295 }
 0x58e   :  { %v1284_v32 = vadd.f32 %v296_v31, %v288_v30 }
 0x590   :  { %1023 = vtanh.f32 %v1284_v32 }
 0x596   :  { %v1024_v33 = vpop.eup %1023 }
 0x597   :  { %301 = vrot.lane.b32.xlu1 %v1024_v33, %s1103_s11 }
 0x609   :  { %v302_v34 = vpop.permute.xlu1 %301 }
 0x60a   :  { %v304_v35 = vmul.f32 %v302_v34, %v285_v28 }
 0x60c   :  { %306 = vrot.lane.b32.xlu2 %v304_v35, %s1104_s1 }
 0x614   :  { %344 = vrot.lane.b32.xlu2 %v304_v35, %s1103_s11 }
 0x666   :  { %v307_v36 = vpop.permute.xlu2 %306 }
 0x667   :  { %976 = vmatmul.msk.f32.vlgmr.msrb.gmra.mxu2 %vm137_vm3, %v307_v36 }
 0x668   :  { %528 = vmatpush.msrb.mxu2 %v1233_v44 }
 0x66a   :  { %529 = vmatpush.msrb.mxu2 %v1235_v45 }
 0x66c   :  { %530 = vmatpush.msrb.mxu2 %v1238_v46 }
 0x66e   :  { %531 = vmatpush.msrb.mxu2 %v1241_v47  ;;  %v345_v53 = vpop.permute.xlu2 %344 }
 0x6ea   :  { %v327_v38 = vpop.f32.mrf.mxu2 }
 0x6eb   :  { %v328_v39 = vadd.f32 %v1260_v52, %v327_v38 }
 0x6ed   :  { %950 = vst.msk [vmem:[%s1465_s3 + $0x8] sm:$0xff] %vm948_vm9, %v328_v39  ;;  %332 = vrot.lane.b32.xlu0 %v328_v39, %s1105_s16 }
 0x75f   :  { %v333_v40 = vpop.permute.xlu0 %332 }
 0x760   :  { %v335_v41 = vsel %vm330_vm15, %v49_v37, %v333_v40 }
 0x761   :  { %338 = vperm.xlu1 %1003, %v335_v41  }
 0x7d3   :  { %v339_v48 = vpop.permute.xlu1 %338 }
 0x7d4   :  { %v341_v49 = vmul.f32 %v1205_v12, %v339_v48 }
 0x7d6   :  { %v342_v50 = vadd.f32 %v341_v49, %v109_v43 }
 0x7d8   :  { %v343_v51 = vmax.f32 %v342_v50, 0.0 }
 0x7da   :  { %v347_v54 = vsel %vm137_vm3, %v343_v51, %v345_v53 }
 0x7db   :  { %977 = vmatmul.msk.f32.vlgmr.msrb.gmra.mxu1 %vm140_vm4, %v347_v54 }
 0x7dc   :  { %771 = vmatpush.msrb.mxu1 %v1135_v3 }
 0x7de   :  { %772 = vmatpush.msrb.mxu1 %v1141_v4 }
 0x7e0   :  { %773 = vmatpush.msrb.mxu1 %v1147_v6 }
 0x7e2   :  { %774 = vmatpush.msrb.mxu1 %v1154_v7 }
 0x7e4   :  { %775 = vmatpush.msrb.mxu1 %v1164_v8 }
 0x7e6   :  { %776 = vmatpush.msrb.mxu1 %v1171_v9 }
 0x7e8   :  { %777 = vmatpush.msrb.mxu1 %v1178_v10 }
 0x7ea   :  { %778 = vmatpush.msrb.mxu1 %v1184_v11 }
 0x858   :  { %v368_v55 = vpop.f32.mrf.mxu1 }
 0x859   :  { %v369_v56 = vadd.f32 %v1224_v21, %v368_v55 }
 0x85b   :  { %1025 = vtanh.f32 %v369_v56  ;;  %v978_v58 = vmul.f32 -1.442695, %v369_v56 }
 0x85d   :  { %1027 = vpow2.f32 %v978_v58 }
 0x861   :  { %v1026_v57 = vpop.eup %1025 }
 0x862   :  { %393 = vrot.lane.b32.xlu0 %v1026_v57, %s1103_s11 }
 0x863   :  { %v1028_v59 = vpop.eup %1027 }
 0x864   :  { %v374_v60 = vadd.f32 1.0, %v1028_v59 }
 0x866   :  { %1029 = vrcp.f32 %v374_v60  ;;  %v386_v2 = vand.u32 2147483648, %v374_v60  ;;  %vm380_vm2 = vweird.f32 %v374_v60  ;;  %v384_v5 = vand.u32 2147483647, %v374_v60 }
 0x868   :  { %v387_v15 = vor.u32 1.1754944e-38, %v386_v2  ;;  %vm385_vm6 = vcmp.eq.f32.partialorder %v384_v5, 8.507059e+37 }
 0x86c   :  { %v1030_v61 = vpop.eup %1029 }
 0x86d   :  { %v376_v62 = vmul.f32 %v1030_v61, %v374_v60  ;;  %vm381_vm0 = vweird.f32 %v1030_v61 }
 0x86e   :  { %vm382_vm5 = vmor %vm380_vm2, %vm381_vm0 }
 0x86f   :  { %v377_v63 = vsub.f32 1.0, %v376_v62  ;;  %v51_v62 = vld [vmem:[%s1462_s0 + $0x20] sm:$0xff] }
 0x870   :  { %967 = vmatmul.msk.f32.gmra.mxu0 %vm56_vm1, %v51_v62  ;;  %vm536_vm13 = vcmp.eq.f32.partialorder %v51_v62, %v51_v62 }
 0x871   :  { %v378_v0 = vmul.f32 %v1030_v61, %v377_v63 }
 0x873   :  { %v379_v1 = vadd.f32 %v1030_v61, %v378_v0 }
 0x875   :  { %v383_v13 = vsel %vm382_vm5, %v1030_v61, %v379_v1 }
 0x876   :  { %v388_v17 = vsel %vm385_vm6, %v387_v15, %v383_v13 }
 0x877   :  { %v391_v19 = vmul.f32 %v388_v17, %v1284_v32  ;;  %v111_v32 = vpop.f32.mrf.mxu0 }
 0x878   :  { %v112_v33 = vadd.f32 %v1207_v14, %v111_v32 }
 0x8d4   :  { %v394_v16 = vpop.permute.xlu0 %393 }
 0x8d5   :  { %v396_v18 = vmul.f32 %v394_v16, %v388_v17 }
 0x8d7   :  { %398 = vrot.lane.b32.xlu1 %v396_v18, %s1104_s1 }
 0x8ed   :  { %v114_v5 = vpop.f32.mrf.mxu0 }
 0x8ee   :  { %v115_v13 = vadd.f32 %v1207_v14, %v114_v5 }
 0x949   :  { %v399_v20 = vpop.permute.xlu1 %398 }
 0x94a   :  { %v1321_v22 = vadd.f32 %v399_v20, %v391_v19 }
 0x94c   :  { %1031 = vtanh.f32 %v1321_v22 }
 0x952   :  { %v1032_v23 = vpop.eup %1031 }
 0x953   :  { %404 = vrot.lane.b32.xlu2 %v1032_v23, %s1103_s11 }
 0x9ad   :  { %v405_v24 = vpop.permute.xlu2 %404 }
 0x9ae   :  { %v407_v25 = vmul.f32 %v405_v24, %v388_v17 }
 0x9b0   :  { %409 = vrot.lane.b32.xlu0 %v407_v25, %s1104_s1 }
 0x9b8   :  { %447 = vrot.lane.b32.xlu0 %v407_v25, %s1103_s11 }
 0xa22   :  { %v410_v26 = vpop.permute.xlu0 %409 }
 0xa23   :  { %979 = vmatmul.msk.f32.vlgmr.msra.gmra.mxu2 %vm137_vm3, %v410_v26 }
 0xa24   :  { %631 = vmatpush.msra.mxu2 %v1233_v44 }
 0xa26   :  { %632 = vmatpush.msra.mxu2 %v1235_v45 }
 0xa28   :  { %633 = vmatpush.msra.mxu2 %v1238_v46 }
 0xa2a   :  { %634 = vmatpush.msra.mxu2 %v1241_v47  ;;  %v448_v38 = vpop.permute.xlu0 %447 }
 0xaa6   :  { %v430_v28 = vpop.f32.mrf.mxu2 }
 0xaa7   :  { %v431_v29 = vadd.f32 %v1260_v52, %v430_v28 }
 0xaa9   :  { %951 = vst.msk [vmem:[%s1465_s3 + $0x10] sm:$0xff] %vm948_vm9, %v431_v29  ;;  %435 = vrot.lane.b32.xlu1 %v431_v29, %s1105_s16 }
 0xb1b   :  { %v436_v30 = vpop.permute.xlu1 %435 }
 0xb1c   :  { %v438_v31 = vsel %vm433_vm7, %v50_v27, %v436_v30 }
 0xb1d   :  { %441 = vperm.xlu2 %1004, %v438_v31  }
 0xb77   :  { %v442_v34 = vpop.permute.xlu2 %441 }
 0xb78   :  { %v444_v35 = vmul.f32 %v1205_v12, %v442_v34 }
 0xb7a   :  { %v445_v36 = vadd.f32 %v444_v35, %v112_v33 }
 0xb7c   :  { %v446_v37 = vmax.f32 %v445_v36, 0.0 }
 0xb7e   :  { %v450_v39 = vsel %vm137_vm3, %v446_v37, %v448_v38 }
 0xb7f   :  { %980 = vmatmul.msk.f32.vlgmr.msrb.gmra.mxu3 %vm140_vm4, %v450_v39 }
 0xb80   :  { %874 = vmatpush.msrb.mxu3 %v1135_v3 }
 0xb82   :  { %875 = vmatpush.msrb.mxu3 %v1141_v4 }
 0xb84   :  { %876 = vmatpush.msrb.mxu3 %v1147_v6 }
 0xb86   :  { %877 = vmatpush.msrb.mxu3 %v1154_v7 }
 0xb88   :  { %878 = vmatpush.msrb.mxu3 %v1164_v8 }
 0xb8a   :  { %879 = vmatpush.msrb.mxu3 %v1171_v9 }
 0xb8c   :  { %880 = vmatpush.msrb.mxu3 %v1178_v10 }
 0xb8e   :  { %881 = vmatpush.msrb.mxu3 %v1184_v11 }
 0xc02   :  { %v471_v40 = vpop.f32.mrf.mxu3 }
 0xc03   :  { %v472_v41 = vadd.f32 %v1224_v21, %v471_v40 }
 0xc05   :  { %1033 = vtanh.f32 %v472_v41  ;;  %v981_v3 = vmul.f32 -1.442695, %v472_v41 }
 0xc07   :  { %1035 = vpow2.f32 %v981_v3 }
 0xc0b   :  { %v1034_v42 = vpop.eup %1033 }
 0xc0c   :  { %496 = vrot.lane.b32.xlu1 %v1034_v42, %s1103_s11 }
 0xc0d   :  { %v1036_v4 = vpop.eup %1035 }
 0xc0e   :  { %v477_v6 = vadd.f32 1.0, %v1036_v4 }
 0xc10   :  { %1037 = vrcp.f32 %v477_v6  ;;  %v489_v10 = vand.u32 2147483648, %v477_v6  ;;  %vm483_vm10 = vweird.f32 %v477_v6  ;;  %v487_v11 = vand.u32 2147483647, %v477_v6 }
 0xc12   :  { %v490_v50 = vor.u32 1.1754944e-38, %v489_v10  ;;  %vm488_vm12 = vcmp.eq.f32.partialorder %v487_v11, 8.507059e+37 }
 0xc16   :  { %v1038_v7 = vpop.eup %1037 }
 0xc17   :  { %v479_v8 = vmul.f32 %v1038_v7, %v477_v6  ;;  %vm484_vm8 = vweird.f32 %v1038_v7 }
 0xc18   :  { %vm485_vm11 = vmor %vm483_vm10, %vm484_vm8 }
 0xc19   :  { %v480_v43 = vsub.f32 1.0, %v479_v8  ;;  %v52_v8 = vld [vmem:[%s1462_s0 + $0x28] sm:$0xff] }
 0xc1a   :  { %968 = vmatmul.msk.f32.gmra.mxu0 %vm56_vm1, %v52_v8  ;;  %vm639_vm5 = vcmp.eq.f32.partialorder %v52_v8, %v52_v8 }
 0xc1b   :  { %v481_v9 = vmul.f32 %v1038_v7, %v480_v43 }
 0xc1d   :  { %v482_v48 = vadd.f32 %v1038_v7, %v481_v9 }
 0xc1f   :  { %v486_v49 = vsel %vm485_vm11, %v1038_v7, %v482_v48 }
 0xc20   :  { %v491_v53 = vsel %vm488_vm12, %v490_v50, %v486_v49 }
 0xc21   :  { %v494_v55 = vmul.f32 %v491_v53, %v1321_v22 }
 0xc7e   :  { %v497_v51 = vpop.permute.xlu1 %496 }
 0xc7f   :  { %v499_v54 = vmul.f32 %v497_v51, %v491_v53 }
 0xc81   :  { %501 = vrot.lane.b32.xlu2 %v499_v54, %s1104_s1 }
 0xc97   :  { %v117_v11 = vpop.f32.mrf.mxu0 }
 0xc98   :  { %v118_v49 = vadd.f32 %v1207_v14, %v117_v11 }
 0xcdb   :  { %v502_v56 = vpop.permute.xlu2 %501 }
 0xcdc   :  { %v504_v57 = vadd.f32 %v502_v56, %v494_v55 }
 0xcde   :  { %1039 = vtanh.f32 %v504_v57 }
 0xce4   :  { %v1040_v58 = vpop.eup %1039 }
 0xce5   :  { %507 = vrot.lane.b32.xlu0 %v1040_v58, %s1103_s11 }
 0xd57   :  { %v508_v59 = vpop.permute.xlu0 %507 }
 0xd58   :  { %v510_v60 = vmul.f32 %v508_v59, %v491_v53 }
 0xd5a   :  { %512 = vrot.lane.b32.xlu1 %v510_v60, %s1104_s1 }
 0xd62   :  { %550 = vrot.lane.b32.xlu1 %v510_v60, %s1103_s11 }
 0xdcc   :  { %v513_v61 = vpop.permute.xlu1 %512 }
 0xdcd   :  { %982 = vmatmul.msk.f32.vlgmr.msrb.gmra.mxu2 %vm137_vm3, %v513_v61 }
 0xdce   :  { %734 = vmatpush.msrb.mxu2 %v1233_v44 }
 0xdd0   :  { %735 = vmatpush.msrb.mxu2 %v1235_v45 }
 0xdd2   :  { %736 = vmatpush.msrb.mxu2 %v1238_v46 }
 0xdd4   :  { %737 = vmatpush.msrb.mxu2 %v1241_v47  ;;  %v551_v19 = vpop.permute.xlu1 %550 }
 0xe50   :  { %v533_v63 = vpop.f32.mrf.mxu2 }
 0xe51   :  { %v534_v0 = vadd.f32 %v1260_v52, %v533_v63 }
 0xe53   :  { %952 = vst.msk [vmem:[%s1465_s3 + $0x18] sm:$0xff] %vm948_vm9, %v534_v0  ;;  %538 = vrot.lane.b32.xlu2 %v534_v0, %s1105_s16 }
 0xead   :  { %v539_v1 = vpop.permute.xlu2 %538 }
 0xeae   :  { %v541_v2 = vsel %vm536_vm13, %v51_v62, %v539_v1 }
 0xeaf   :  { %544 = vperm.xlu0 %1002, %v541_v2  }
 0xf21   :  { %v545_v15 = vpop.permute.xlu0 %544 }
 0xf22   :  { %v547_v16 = vmul.f32 %v1205_v12, %v545_v15 }
 0xf24   :  { %v548_v17 = vadd.f32 %v547_v16, %v115_v13 }
 0xf26   :  { %v549_v18 = vmax.f32 %v548_v17, 0.0 }
 0xf28   :  { %v553_v20 = vsel %vm137_vm3, %v549_v18, %v551_v19 }
 0xf29   :  { %983 = vmatmul.msk.f32.vlgmr.msra.gmra.mxu1 %vm140_vm4, %v553_v20 }
 0xfa6   :  { %v574_v22 = vpop.f32.mrf.mxu1 }
 0xfa7   :  { %v575_v23 = vadd.f32 %v1224_v21, %v574_v22 }
 0xfa9   :  { %1041 = vtanh.f32 %v575_v23  ;;  %v984_v25 = vmul.f32 -1.442695, %v575_v23 }
 0xfab   :  { %1043 = vpow2.f32 %v984_v25 }
 0xfaf   :  { %v1042_v24 = vpop.eup %1041 }
 0xfb0   :  { %599 = vrot.lane.b32.xlu2 %v1042_v24, %s1103_s11 }
 0xfb1   :  { %v1044_v26 = vpop.eup %1043 }
 0xfb2   :  { %v580_v27 = vadd.f32 1.0, %v1044_v26 }
 0xfb4   :  { %1045 = vrcp.f32 %v580_v27  ;;  %v592_v33 = vand.u32 2147483648, %v580_v27  ;;  %vm586_vm15 = vweird.f32 %v580_v27  ;;  %v590_v34 = vand.u32 2147483647, %v580_v27 }
 0xfb6   :  { %v593_v36 = vor.u32 1.1754944e-38, %v592_v33  ;;  %vm591_vm2 = vcmp.eq.f32.partialorder %v590_v34, 8.507059e+37 }
 0xfba   :  { %v1046_v28 = vpop.eup %1045 }
 0xfbb   :  { %v582_v29 = vmul.f32 %v1046_v28, %v580_v27  ;;  %vm587_vm14 = vweird.f32 %v1046_v28 }
 0xfbc   :  { %vm588_vm0 = vmor %vm586_vm15, %vm587_vm14 }
 0xfbd   :  { %v583_v30 = vsub.f32 1.0, %v582_v29  ;;  %v53_v29 = vld [vmem:[%s1462_s0 + $0x30] sm:$0xff] }
 0xfbe   :  { %969 = vmatmul.msk.f32.gmra.mxu0 %vm56_vm1, %v53_v29  ;;  %vm742_vm11 = vcmp.eq.f32.partialorder %v53_v29, %v53_v29 }
 0xfbf   :  { %v584_v31 = vmul.f32 %v1046_v28, %v583_v30 }
 0xfc1   :  { %v585_v32 = vadd.f32 %v1046_v28, %v584_v31 }
 0xfc3   :  { %v589_v35 = vsel %vm588_vm0, %v1046_v28, %v585_v32 }
 0xfc4   :  { %v594_v38 = vsel %vm591_vm2, %v593_v36, %v589_v35 }
 0xfc5   :  { %v597_v40 = vmul.f32 %v594_v38, %v504_v57 }
0x100a   :  { %v600_v37 = vpop.permute.xlu2 %599 }
0x100b   :  { %v602_v39 = vmul.f32 %v600_v37, %v594_v38 }
0x100d   :  { %604 = vrot.lane.b32.xlu0 %v602_v39, %s1104_s1 }
0x107f   :  { %v605_v41 = vpop.permute.xlu0 %604 }
0x1080   :  { %v607_v42 = vadd.f32 %v605_v41, %v597_v40 }
0x1082   :  { %1047 = vtanh.f32 %v607_v42 }
0x1088   :  { %v1048_v3 = vpop.eup %1047 }
0x1089   :  { %610 = vrot.lane.b32.xlu1 %v1048_v3, %s1103_s11 }
0x10fb   :  { %v611_v4 = vpop.permute.xlu1 %610 }
0x10fc   :  { %v613_v6 = vmul.f32 %v611_v4, %v594_v38 }
0x10fe   :  { %615 = vrot.lane.b32.xlu2 %v613_v6, %s1104_s1 }
0x1106   :  { %653 = vrot.lane.b32.xlu2 %v613_v6, %s1103_s11 }
0x1158   :  { %v616_v7 = vpop.permute.xlu2 %615 }
0x1159   :  { %985 = vmatmul.msk.f32.vlgmr.msra.gmra.mxu2 %vm137_vm3, %v616_v7 }
0x115a   :  { %837 = vmatpush.msra.mxu2 %v1233_v44 }
0x115c   :  { %838 = vmatpush.msra.mxu2 %v1235_v45 }
0x115e   :  { %839 = vmatpush.msra.mxu2 %v1238_v46 }
0x1160   :  { %840 = vmatpush.msra.mxu2 %v1241_v47  ;;  %v654_v55 = vpop.permute.xlu2 %653 }
0x11dc   :  { %v636_v43 = vpop.f32.mrf.mxu2 }
0x11dd   :  { %v637_v9 = vadd.f32 %v1260_v52, %v636_v43 }
0x11df   :  { %953 = vst.msk [vmem:[%s1465_s3 + $0x20] sm:$0xff] %vm948_vm9, %v637_v9  ;;  %641 = vrot.lane.b32.xlu0 %v637_v9, %s1105_s16 }
0x1251   :  { %v642_v48 = vpop.permute.xlu0 %641 }
0x1252   :  { %v644_v10 = vsel %vm639_vm5, %v52_v8, %v642_v48 }
0x1253   :  { %647 = vperm.xlu1 %1003, %v644_v10  }
0x12c5   :  { %v648_v50 = vpop.permute.xlu1 %647 }
0x12c6   :  { %v650_v51 = vmul.f32 %v1205_v12, %v648_v50 }
0x12c8   :  { %v651_v53 = vadd.f32 %v650_v51, %v118_v49 }
0x12ca   :  { %v652_v54 = vmax.f32 %v651_v53, 0.0 }
0x12cc   :  { %v656_v56 = vsel %vm137_vm3, %v652_v54, %v654_v55 }
0x12cd   :  { %986 = vmatmul.msk.f32.vlgmr.msra.gmra.mxu3 %vm140_vm4, %v656_v56 }
0x1350   :  { %v677_v57 = vpop.f32.mrf.mxu3 }
0x1351   :  { %v678_v58 = vadd.f32 %v1224_v21, %v677_v57 }
0x1353   :  { %1049 = vtanh.f32 %v678_v58  ;;  %v987_v60 = vmul.f32 -1.442695, %v678_v58 }
0x1355   :  { %1051 = vpow2.f32 %v987_v60  ;;  %v54_v60 = vld [vmem:[%s1462_s0 + $0x38] sm:$0xff] }
0x1356   :  { %970 = vmatmul.msk.f32.gmra.mxu0 %vm56_vm1, %v54_v60  ;;  %vm845_vm0 = vcmp.eq.f32.partialorder %v54_v60, %v54_v60 }
0x1359   :  { %v1050_v59 = vpop.eup %1049 }
0x135a   :  { %702 = vrot.lane.b32.xlu0 %v1050_v59, %s1103_s11 }
0x135b   :  { %v1052_v61 = vpop.eup %1051 }
0x135c   :  { %v683_v62 = vadd.f32 1.0, %v1052_v61 }
0x135e   :  { %1053 = vrcp.f32 %v683_v62  ;;  %v695_v13 = vand.u32 2147483648, %v683_v62  ;;  %vm689_vm7 = vweird.f32 %v683_v62  ;;  %v693_v15 = vand.u32 2147483647, %v683_v62 }
0x1360   :  { %v696_v17 = vor.u32 1.1754944e-38, %v695_v13  ;;  %vm694_vm10 = vcmp.eq.f32.partialorder %v693_v15, 8.507059e+37 }
0x1364   :  { %v1054_v63 = vpop.eup %1053 }
0x1365   :  { %v685_v0 = vmul.f32 %v1054_v63, %v683_v62  ;;  %vm690_vm6 = vweird.f32 %v1054_v63 }
0x1366   :  { %vm691_vm8 = vmor %vm689_vm7, %vm690_vm6 }
0x1367   :  { %v686_v1 = vsub.f32 1.0, %v685_v0 }
0x1369   :  { %v687_v2 = vmul.f32 %v1054_v63, %v686_v1 }
0x136b   :  { %v688_v5 = vadd.f32 %v1054_v63, %v687_v2 }
0x136d   :  { %v692_v16 = vsel %vm691_vm8, %v1054_v63, %v688_v5 }
0x136e   :  { %v697_v19 = vsel %vm694_vm10, %v696_v17, %v692_v16 }
0x136f   :  { %v700_v22 = vmul.f32 %v697_v19, %v607_v42 }
0x13cc   :  { %v703_v18 = vpop.permute.xlu0 %702 }
0x13cd   :  { %v705_v20 = vmul.f32 %v703_v18, %v697_v19 }
0x13cf   :  { %707 = vrot.lane.b32.xlu1 %v705_v20, %s1104_s1 }
0x1441   :  { %v708_v23 = vpop.permute.xlu1 %707 }
0x1442   :  { %v710_v24 = vadd.f32 %v708_v23, %v700_v22 }
0x1444   :  { %1055 = vtanh.f32 %v710_v24 }
0x144a   :  { %v1056_v25 = vpop.eup %1055 }
0x144b   :  { %713 = vrot.lane.b32.xlu2 %v1056_v25, %s1103_s11 }
0x14a5   :  { %v714_v26 = vpop.permute.xlu2 %713 }
0x14a6   :  { %v716_v27 = vmul.f32 %v714_v26, %v697_v19 }
0x14a8   :  { %718 = vrot.lane.b32.xlu0 %v716_v27, %s1104_s1 }
0x14b0   :  { %756 = vrot.lane.b32.xlu0 %v716_v27, %s1103_s11 }
0x151a   :  { %v719_v28 = vpop.permute.xlu0 %718 }
0x151b   :  { %988 = vmatmul.msk.f32.vlgmr.msrb.gmra.mxu2 %vm137_vm3, %v719_v28 }
0x151c   :  { %940 = vmatpush.msrb.mxu2 %v1233_v44 }
0x151e   :  { %941 = vmatpush.msrb.mxu2 %v1235_v45 }
0x1520   :  { %942 = vmatpush.msrb.mxu2 %v1238_v46  ;;  %v120_v46 = vpop.f32.mrf.mxu0 }
0x1522   :  { %943 = vmatpush.msrb.mxu2 %v1241_v47  ;;  %v121_v47 = vadd.f32 %v1207_v14, %v120_v46  ;;  %v757_v36 = vpop.permute.xlu0 %756 }
0x1528   :  { %v123_v1 = vpop.f32.mrf.mxu0 }
0x1529   :  { %v124_v2 = vadd.f32 %v1207_v14, %v123_v1 }
0x159e   :  { %v739_v30 = vpop.f32.mrf.mxu2 }
0x159f   :  { %v740_v31 = vadd.f32 %v1260_v52, %v739_v30 }
0x15a1   :  { %954 = vst.msk [vmem:[%s1465_s3 + $0x28] sm:$0xff] %vm948_vm9, %v740_v31  ;;  %744 = vrot.lane.b32.xlu1 %v740_v31, %s1105_s16 }
0x1613   :  { %v745_v44 = vpop.permute.xlu1 %744 }
0x1614   :  { %v747_v45 = vsel %vm742_vm11, %v53_v29, %v745_v44 }
0x1615   :  { %750 = vperm.xlu2 %1004, %v747_v45  }
0x166f   :  { %v751_v32 = vpop.permute.xlu2 %750 }
0x1670   :  { %v753_v33 = vmul.f32 %v1205_v12, %v751_v32 }
0x1672   :  { %v754_v34 = vadd.f32 %v753_v33, %v121_v47 }
0x1674   :  { %v755_v35 = vmax.f32 %v754_v34, 0.0 }
0x1676   :  { %v759_v37 = vsel %vm137_vm3, %v755_v35, %v757_v36 }
0x1677   :  { %989 = vmatmul.msk.f32.vlgmr.msrb.gmra.mxu1 %vm140_vm4, %v759_v37 }
0x16f4   :  { %v780_v38 = vpop.f32.mrf.mxu1 }
0x16f5   :  { %v781_v39 = vadd.f32 %v1224_v21, %v780_v38 }
0x16f7   :  { %1057 = vtanh.f32 %v781_v39  ;;  %v990_v41 = vmul.f32 -1.442695, %v781_v39 }
0x16f9   :  { %1059 = vpow2.f32 %v990_v41 }
0x16fd   :  { %v1058_v40 = vpop.eup %1057 }
0x16fe   :  { %805 = vrot.lane.b32.xlu1 %v1058_v40, %s1103_s11 }
0x16ff   :  { %v1060_v42 = vpop.eup %1059 }
0x1700   :  { %v786_v3 = vadd.f32 1.0, %v1060_v42 }
0x1702   :  { %1061 = vrcp.f32 %v786_v3  ;;  %v798_v9 = vand.u32 2147483648, %v786_v3  ;;  %vm792_vm13 = vweird.f32 %v786_v3  ;;  %v796_v48 = vand.u32 2147483647, %v786_v3 }
0x1704   :  { %v799_v11 = vor.u32 1.1754944e-38, %v798_v9  ;;  %vm797_vm15 = vcmp.eq.f32.partialorder %v796_v48, 8.507059e+37 }
0x1708   :  { %v1062_v4 = vpop.eup %1061 }
0x1709   :  { %v788_v6 = vmul.f32 %v1062_v4, %v786_v3  ;;  %vm793_vm12 = vweird.f32 %v1062_v4 }
0x170a   :  { %vm794_vm14 = vmor %vm792_vm13, %vm793_vm12 }
0x170b   :  { %v789_v7 = vsub.f32 1.0, %v788_v6 }
0x170d   :  { %v790_v8 = vmul.f32 %v1062_v4, %v789_v7 }
0x170f   :  { %v791_v43 = vadd.f32 %v1062_v4, %v790_v8 }
0x1711   :  { %v795_v10 = vsel %vm794_vm14, %v1062_v4, %v791_v43 }
0x1712   :  { %v800_v50 = vsel %vm797_vm15, %v799_v11, %v795_v10 }
0x1713   :  { %v803_v53 = vmul.f32 %v800_v50, %v710_v24 }
0x1770   :  { %v806_v49 = vpop.permute.xlu1 %805 }
0x1771   :  { %v808_v51 = vmul.f32 %v806_v49, %v800_v50 }
0x1773   :  { %810 = vrot.lane.b32.xlu2 %v808_v51, %s1104_s1 }
0x17cd   :  { %v811_v54 = vpop.permute.xlu2 %810 }
0x17ce   :  { %v813_v55 = vadd.f32 %v811_v54, %v803_v53 }
0x17d0   :  { %1063 = vtanh.f32 %v813_v55 }
0x17d6   :  { %v1064_v56 = vpop.eup %1063 }
0x17d7   :  { %816 = vrot.lane.b32.xlu0 %v1064_v56, %s1103_s11 }
0x1849   :  { %v817_v57 = vpop.permute.xlu0 %816 }
0x184a   :  { %v819_v58 = vmul.f32 %v817_v57, %v800_v50 }
0x184c   :  { %821 = vrot.lane.b32.xlu1 %v819_v58, %s1104_s1 }
0x1854   :  { %859 = vrot.lane.b32.xlu1 %v819_v58, %s1103_s11 }
0x18be   :  { %v822_v59 = vpop.permute.xlu1 %821 }
0x18bf   :  { %991 = vmatmul.msk.f32.vlgmr.msra.gmra.mxu2 %vm137_vm3, %v822_v59 }
0x18c6   :  { %v860_v17 = vpop.permute.xlu1 %859 }
0x1942   :  { %v842_v61 = vpop.f32.mrf.mxu2 }
0x1943   :  { %v843_v62 = vadd.f32 %v1260_v52, %v842_v61 }
0x1945   :  { %955 = vst.msk [vmem:[%s1465_s3 + $0x30] sm:$0xff] %vm948_vm9, %v843_v62  ;;  %847 = vrot.lane.b32.xlu2 %v843_v62, %s1105_s16 }
0x199f   :  { %v848_v63 = vpop.permute.xlu2 %847 }
0x19a0   :  { %v850_v0 = vsel %vm845_vm0, %v54_v60, %v848_v63 }
0x19a1   :  { %853 = vperm.xlu0 %1002, %v850_v0  }
0x1a13   :  { %v854_v5 = vpop.permute.xlu0 %853 }
0x1a14   :  { %v856_v13 = vmul.f32 %v1205_v12, %v854_v5 }
0x1a16   :  { %v857_v15 = vadd.f32 %v856_v13, %v124_v2 }
0x1a18   :  { %v858_v16 = vmax.f32 %v857_v15, 0.0 }
0x1a1a   :  { %v862_v18 = vsel %vm137_vm3, %v858_v16, %v860_v17 }
0x1a1b   :  { %992 = vmatmul.msk.f32.vlgmr.msrb.gmra.mxu3 %vm140_vm4, %v862_v18 }
0x1a9e   :  { %v883_v19 = vpop.f32.mrf.mxu3 }
0x1a9f   :  { %v884_v20 = vadd.f32 %v1224_v21, %v883_v19 }
0x1aa1   :  { %1065 = vtanh.f32 %v884_v20  ;;  %v993_v23 = vmul.f32 -1.442695, %v884_v20 }
0x1aa3   :  { %1067 = vpow2.f32 %v993_v23 }
0x1aa7   :  { %v1066_v22 = vpop.eup %1065 }
0x1aa8   :  { %908 = vrot.lane.b32.xlu2 %v1066_v22, %s1103_s11 }
0x1aa9   :  { %v1068_v14 = vpop.eup %1067 }
0x1aaa   :  { %v889_v24 = vadd.f32 1.0, %v1068_v14 }
0x1aac   :  { %1069 = vrcp.f32 %v889_v24  ;;  %v901_v29 = vand.u32 2147483648, %v889_v24  ;;  %vm895_vm4 = vweird.f32 %v889_v24  ;;  %v899_v30 = vand.u32 2147483647, %v889_v24 }
0x1aae   :  { %v902_v31 = vor.u32 1.1754944e-38, %v901_v29  ;;  %vm900_vm5 = vcmp.eq.f32.partialorder %v899_v30, 8.507059e+37 }
0x1ab2   :  { %v1070_v12 = vpop.eup %1069 }
0x1ab3   :  { %v891_v25 = vmul.f32 %v1070_v12, %v889_v24  ;;  %vm896_vm1 = vweird.f32 %v1070_v12 }
0x1ab4   :  { %vm897_vm2 = vmor %vm895_vm4, %vm896_vm1 }
0x1ab5   :  { %v892_v26 = vsub.f32 1.0, %v891_v25 }
0x1ab7   :  { %v893_v27 = vmul.f32 %v1070_v12, %v892_v26 }
0x1ab9   :  { %v894_v28 = vadd.f32 %v1070_v12, %v893_v27 }
0x1abb   :  { %v898_v21 = vsel %vm897_vm2, %v1070_v12, %v894_v28 }
0x1abc   :  { %v903_v45 = vsel %vm900_vm5, %v902_v31, %v898_v21 }
0x1abd   :  { %v906_v47 = vmul.f32 %v903_v45, %v813_v55 }
0x1b02   :  { %v909_v44 = vpop.permute.xlu2 %908 }
0x1b03   :  { %v911_v46 = vmul.f32 %v909_v44, %v903_v45 }
0x1b05   :  { %913 = vrot.lane.b32.xlu0 %v911_v46, %s1104_s1 }
0x1b77   :  { %v914_v32 = vpop.permute.xlu0 %913 }
0x1b78   :  { %v916_v33 = vadd.f32 %v914_v32, %v906_v47 }
0x1b7a   :  { %1071 = vtanh.f32 %v916_v33 }
0x1b80   :  { %v1072_v34 = vpop.eup %1071 }
0x1b81   :  { %919 = vrot.lane.b32.xlu1 %v1072_v34, %s1103_s11 }
0x1bf3   :  { %v920_v35 = vpop.permute.xlu1 %919 }
0x1bf4   :  { %v922_v36 = vmul.f32 %v920_v35, %v903_v45 }
0x1bf6   :  { %924 = vrot.lane.b32.xlu2 %v922_v36, %s1104_s1 }
0x1c50   :  { %v925_v37 = vpop.permute.xlu2 %924 }
0x1c51   :  { %994 = vmatmul.msk.f32.vlgmr.msrb.gmra.mxu2 %vm137_vm3, %v925_v37 }
0x1cd4   :  { %v945_v38 = vpop.f32.mrf.mxu2 }
0x1cd5   :  { %v946_v39 = vadd.f32 %v1260_v52, %v945_v38 }
0x1cd7   :  { %956 = vst.msk [vmem:[%s1465_s3 + $0x38] sm:$0xff] %vm948_vm9, %v946_v39 }
0x1cd8   :  { %961 = vsyncpa [#allocation3], 1 }

</bundles_post_ra>
